<compile_context>
chip_gen: v5e
topology: v5e:2x2
jax: 0.10.0
libtpu: 0.0.40
codegen_flags: <defaults>
</compile_context>

<pallas_src>
import jax
import jax.numpy as jnp
from jax.experimental import pallas as pl
from jax.experimental.pallas import tpu as pltpu


def _round_up(x, m):
    return (x + m - 1) // m * m


def _pad_to(a, shape):
    return jnp.pad(a, [(0, t - s) for s, t in zip(a.shape, shape)])


# ---------------------------------------------------------------------------
# Kernel
# ---------------------------------------------------------------------------
def deepdep_kernel(
    mut_ref, fpr_ref,
    w1m_ref, b1m_ref, w2m_ref, b2m_ref, w31m_ref, b31m_ref,
    w1f_ref, b1f_ref, w2f_ref, b2f_ref, w31f_ref, b31f_ref,
    wm1a_ref, wm1b_ref, bm1_ref, wm2_ref, bm2_ref, wo_ref,
    out_ref,
):
    f32, bf16 = jnp.float32, jnp.bfloat16

    def dense(x, w_ref, b_ref, relu=True):
        y = jnp.dot(x, w_ref[...], preferred_element_type=f32) + b_ref[...]
        return jnp.maximum(y, 0.0) if relu else y

    # --- VAE(mut) encoder: fc1 -> relu -> fc2 -> relu -> fc31 (= mu_mut) ---
    h = dense(mut_ref[...], w1m_ref, b1m_ref).astype(bf16)
    h = dense(h, w2m_ref, b2m_ref).astype(bf16)
    mu_mut = dense(h, w31m_ref, b31m_ref, relu=False).astype(bf16)

    # --- VAE(fprint) encoder ---
    g = dense(fpr_ref[...], w1f_ref, b1f_ref).astype(bf16)
    g = dense(g, w2f_ref, b2f_ref).astype(bf16)
    mu_fpr = dense(g, w31f_ref, b31f_ref, relu=False).astype(bf16)

    # --- merged head ---
    # cat([mu_mut, mu_fpr], 1) @ W1 computed as an exact split matmul:
    #   cat([a, b]) @ W == a @ W[:lat] + b @ W[lat:]
    m1 = (jnp.dot(mu_mut, wm1a_ref[...], preferred_element_type=f32)
          + jnp.dot(mu_fpr, wm1b_ref[...], preferred_element_type=f32)
          + bm1_ref[...])
    m1 = jnp.maximum(m1, 0.0).astype(bf16)
    m2 = jnp.maximum(
        jnp.dot(m1, wm2_ref[...], preferred_element_type=f32) + bm2_ref[...], 0.0)

    # fc_out (N=1): VPU multiply + cross-lane reduce instead of a 1-wide MXU
    # matmul.  The scalar bias bo is added outside the kernel.
    out_ref[...] = jnp.sum(m2 * wo_ref[...], axis=-1, keepdims=True)


# ---------------------------------------------------------------------------
# Parameters (PyTorch-style init, unpadded f32) + padding / bf16 cast
# ---------------------------------------------------------------------------
def linear_params(key, in_dim, out_dim):
    """nn.Linear-style init; weight stored as (in, out), bias as (1, out)."""
    kw, kb = jax.random.split(key)
    bound = 1.0 / float(in_dim) ** 0.5
    w = jax.random.uniform(kw, (in_dim, out_dim), jnp.float32, -bound, bound)
    b = jax.random.uniform(kb, (1, out_dim), jnp.float32, -bound, bound)
    return w, b


def make_deepdep_params(key, dims_mut, fprint_dim,
                        first_layer_dim=1000, second_layer_dim=100, latent_dim=50):
    keys = jax.random.split(key, 9)
    # VAE mut encoder (only fc1/fc2/fc31 reach the DeepDEP output)
    w1m, b1m = linear_params(keys[0], dims_mut, first_layer_dim)
    w2m, b2m = linear_params(keys[1], first_layer_dim, second_layer_dim)
    w31m, b31m = linear_params(keys[2], second_layer_dim, latent_dim)
    # VAE fprint encoder
    w1f, b1f = linear_params(keys[3], fprint_dim, first_layer_dim)
    w2f, b2f = linear_params(keys[4], first_layer_dim, second_layer_dim)
    w31f, b31f = linear_params(keys[5], second_layer_dim, latent_dim)
    # merged head
    dense = 2 * latent_dim
    wm1, bm1 = linear_params(keys[6], dense, dense)
    wm2, bm2 = linear_params(keys[7], dense, dense)
    wo, bo = linear_params(keys[8], dense, 1)
    return (w1m, b1m, w2m, b2m, w31m, b31m,
            w1f, b1f, w2f, b2f, w31f, b31f,
            wm1, bm1, wm2, bm2, wo, bo)


def pad_and_cast_params(params):
    """Zero-pad to lane-friendly dims, cast weights to bf16 (biases stay f32)."""
    (w1m, b1m, w2m, b2m, w31m, b31m,
     w1f, b1f, w2f, b2f, w31f, b31f,
     wm1, bm1, wm2, bm2, wo, bo) = params
    bf16 = jnp.bfloat16

    dm, l1 = w1m.shape
    df = w1f.shape[0]
    l2 = w2m.shape[1]
    lat = w31m.shape[1]
    dense = wm2.shape[1]

    dm_p, df_p = _round_up(dm, 128), _round_up(df, 128)
    l1_p, l2_p = _round_up(l1, 128), _round_up(l2, 128)
    lat_p = _round_up(lat, 64)          # 50 -> 64
    dense_p = _round_up(dense, 128)     # 100 -> 128

    w1m_p = _pad_to(w1m, (dm_p, l1_p)).astype(bf16)
    b1m_p = _pad_to(b1m, (1, l1_p))
    w2m_p = _pad_to(w2m, (l1_p, l2_p)).astype(bf16)
    b2m_p = _pad_to(b2m, (1, l2_p))
    w31m_p = _pad_to(w31m, (l2_p, lat_p)).astype(bf16)
    b31m_p = _pad_to(b31m, (1, lat_p))

    w1f_p = _pad_to(w1f, (df_p, l1_p)).astype(bf16)
    b1f_p = _pad_to(b1f, (1, l1_p))
    w2f_p = _pad_to(w2f, (l1_p, l2_p)).astype(bf16)
    b2f_p = _pad_to(b2f, (1, l2_p))
    w31f_p = _pad_to(w31f, (l2_p, lat_p)).astype(bf16)
    b31f_p = _pad_to(b31f, (1, lat_p))

    # split fc_merged1 along its input rows (mut half / fprint half)
    wm1a_p = _pad_to(wm1[:lat], (lat_p, dense_p)).astype(bf16)
    wm1b_p = _pad_to(wm1[lat:], (lat_p, dense_p)).astype(bf16)
    bm1_p = _pad_to(bm1, (1, dense_p))
    wm2_p = _pad_to(wm2, (dense_p, dense_p)).astype(bf16)
    bm2_p = _pad_to(bm2, (1, dense_p))
    wo_p = _pad_to(wo.T, (1, dense_p))          # (dense,1) -> (1,dense_p), f32

    return (w1m_p, b1m_p, w2m_p, b2m_p, w31m_p, b31m_p,
            w1f_p, b1f_p, w2f_p, b2f_p, w31f_p, b31f_p,
            wm1a_p, wm1b_p, bm1_p, wm2_p, bm2_p, wo_p, bo)


# ---------------------------------------------------------------------------
# Wrapper
# ---------------------------------------------------------------------------
def deepdep_forward(mut, fprint, kparams, *, batch_tile=256):
    """mut: (B, dims_mut) f32, fprint: (B, fprint_dim) f32. Returns (B, 1) f32."""
    B = mut.shape[0]
    weight_ops, bo = kparams[:-1], kparams[-1]
    dm_p = weight_ops[0].shape[0]   # padded dims_mut
    df_p = weight_ops[6].shape[0]   # padded fprint_dim

    # Batch tile: multiple of 8 (f32 sublane); up to 256 to match the MXU M
    # width on v6e/v7x.  Pad B up to a multiple of the tile.
    tb = min(batch_tile, _round_up(B, 8))
    b_pad = _round_up(B, tb)

    mut_p = _pad_to(mut, (b_pad, dm_p)).astype(jnp.bfloat16)
    fpr_p = _pad_to(fprint, (b_pad, df_p)).astype(jnp.bfloat16)

    batch_map = lambda i: (i, 0)
    const_map = lambda i: (0, 0)    # weights stay resident across grid steps

    in_specs = (
        [pl.BlockSpec((tb, dm_p), batch_map),
         pl.BlockSpec((tb, df_p), batch_map)]
        + [pl.BlockSpec(w.shape, const_map) for w in weight_ops]
    )

    out = pl.pallas_call(
        deepdep_kernel,
        out_shape=jax.ShapeDtypeStruct((b_pad, 1), jnp.float32),
        grid=(b_pad // tb,),
        in_specs=in_specs,
        out_specs=pl.BlockSpec((tb, 1), batch_map),
        compiler_params=pltpu.CompilerParams(
            dimension_semantics=("parallel",),       # v7x: 2 TCs share the batch
            vmem_limit_bytes=48 * 1024 * 1024,       # fits v5e/v6e/v7x
        ),
    )(mut_p, fpr_p, *weight_ops)

    return out[:B] + bo             # fc_out scalar bias added outside the kernel


# ---------------------------------------------------------------------------
# Pure-JAX references
# ---------------------------------------------------------------------------
def reference_matched(mut, fprint, kparams):
    """Same padded bf16 weights / f32 accumulation as the kernel."""
    (w1m, b1m, w2m, b2m, w31m, b31m,
     w1f, b1f, w2f, b2f, w31f, b31f,
     wm1a, wm1b, bm1, wm2, bm2, wo, bo) = kparams
    bf16, f32 = jnp.bfloat16, jnp.float32

    def dense(x, w, b, relu=True):
        y = jnp.dot(x, w, preferred_element_type=f32) + b
        return jnp.maximum(y, 0.0) if relu else y

    x = _pad_to(mut, (mut.shape[0], w1m.shape[0])).astype(bf16)
    h = dense(x, w1m, b1m).astype(bf16)
    h = dense(h, w2m, b2m).astype(bf16)
    mu_m = dense(h, w31m, b31m, relu=False).astype(bf16)

    y = _pad_to(fprint, (fprint.shape[0], w1f.shape[0])).astype(bf16)
    g = dense(y, w1f, b1f).astype(bf16)
    g = dense(g, w2f, b2f).astype(bf16)
    mu_f = dense(g, w31f, b31f, relu=False).astype(bf16)

    m1 = jnp.maximum(jnp.dot(mu_m, wm1a, preferred_element_type=f32)
                     + jnp.dot(mu_f, wm1b, preferred_element_type=f32) + bm1, 0.0)
    m1 = m1.astype(bf16)
    m2 = jnp.maximum(jnp.dot(m1, wm2, preferred_element_type=f32) + bm2, 0.0)
    return jnp.sum(m2 * wo, axis=-1, keepdims=True) + bo


def reference_f32(mut, fprint, params):
    """Plain f32 reference on the unpadded parameters (module semantics)."""
    (w1m, b1m, w2m, b2m, w31m, b31m,
     w1f, b1f, w2f, b2f, w31f, b31f,
     wm1, bm1, wm2, bm2, wo, bo) = params
    h = jax.nn.relu(mut @ w1m + b1m)
    h = jax.nn.relu(h @ w2m + b2m)
    mu_m = h @ w31m + b31m
    g = jax.nn.relu(fprint @ w1f + b1f)
    g = jax.nn.relu(g @ w2f + b2f)
    mu_f = g @ w31f + b31f
    m = jax.nn.relu(jnp.concatenate([mu_m, mu_f], axis=1) @ wm1 + bm1)
    m = jax.nn.relu(m @ wm2 + bm2)
    return m @ wo + bo


if __name__ == "__main__":
    # Small but module-consistent shapes: dims_mut=64, fprint_dim=48,
    # hidden = 1000/100, latent = 50, dense_layer_dim = 100 (= 2 * latent).
    B, dims_mut, fprint_dim = 2, 64, 48

    key = jax.random.PRNGKey(0)
    k_mut, k_fpr, k_params = jax.random.split(key, 3)
    mut = jax.random.normal(k_mut, (B, dims_mut), jnp.float32)
    fprint = jax.random.normal(k_fpr, (B, fprint_dim), jnp.float32)

    params = make_deepdep_params(k_params, dims_mut, fprint_dim)
    kparams = pad_and_cast_params(params)

    out = deepdep_forward(mut, fprint, kparams)
    jax.block_until_ready(out)
    assert out.shape == (B, 1)

    ref_m = reference_matched(mut, fprint, kparams)   # same precision path
    ref_f = reference_f32(mut, fprint, params)        # module-semantics f32
    assert jnp.allclose(out, ref_m, atol=1e-2, rtol=1e-2)
    assert jnp.allclose(out, ref_f, atol=5e-2, rtol=5e-2)
    print("KERNEL_OK")
</pallas_src>

<mosaic_0001>
module attributes {stable_mosaic.version = 11 : i64} {
  func.func @deepdep_kernel(%arg0: i32, %arg1: memref<8x128xbf16, #tpu.memory_space<vmem>>, %arg2: memref<8x128xbf16, #tpu.memory_space<vmem>>, %arg3: memref<128x1024xbf16, #tpu.memory_space<vmem>>, %arg4: memref<1x1024xf32, #tpu.memory_space<vmem>>, %arg5: memref<1024x128xbf16, #tpu.memory_space<vmem>>, %arg6: memref<1x128xf32, #tpu.memory_space<vmem>>, %arg7: memref<128x64xbf16, #tpu.memory_space<vmem>>, %arg8: memref<1x64xf32, #tpu.memory_space<vmem>>, %arg9: memref<128x1024xbf16, #tpu.memory_space<vmem>>, %arg10: memref<1x1024xf32, #tpu.memory_space<vmem>>, %arg11: memref<1024x128xbf16, #tpu.memory_space<vmem>>, %arg12: memref<1x128xf32, #tpu.memory_space<vmem>>, %arg13: memref<128x64xbf16, #tpu.memory_space<vmem>>, %arg14: memref<1x64xf32, #tpu.memory_space<vmem>>, %arg15: memref<64x128xbf16, #tpu.memory_space<vmem>>, %arg16: memref<64x128xbf16, #tpu.memory_space<vmem>>, %arg17: memref<1x128xf32, #tpu.memory_space<vmem>>, %arg18: memref<128x128xbf16, #tpu.memory_space<vmem>>, %arg19: memref<1x128xf32, #tpu.memory_space<vmem>>, %arg20: memref<1x128xf32, #tpu.memory_space<vmem>>, %arg21: memref<8x1xf32, #tpu.memory_space<vmem>>) attributes {dimension_semantics = [#tpu.dimension_semantics<parallel>], iteration_bounds = array<i64: 1>, scalar_prefetch = 0 : i64, scratch_operands = 0 : i64, tpu.core_type = #tpu.core_type<tc>, window_params = [{transform_indices = @transform_0, window_bounds = array<i64: 8, 128>}, {transform_indices = @transform_1, window_bounds = array<i64: 8, 128>}, {pipeline_mode = #tpu.pipeline_mode<synchronous>, transform_indices = @transform_2, window_bounds = array<i64: 128, 1024>}, {pipeline_mode = #tpu.pipeline_mode<synchronous>, transform_indices = @transform_3, window_bounds = array<i64: 1, 1024>}, {pipeline_mode = #tpu.pipeline_mode<synchronous>, transform_indices = @transform_4, window_bounds = array<i64: 1024, 128>}, {pipeline_mode = #tpu.pipeline_mode<synchronous>, transform_indices = @transform_5, window_bounds = array<i64: 1, 128>}, {pipeline_mode = #tpu.pipeline_mode<synchronous>, transform_indices = @transform_6, window_bounds = array<i64: 128, 64>}, {pipeline_mode = #tpu.pipeline_mode<synchronous>, transform_indices = @transform_7, window_bounds = array<i64: 1, 64>}, {pipeline_mode = #tpu.pipeline_mode<synchronous>, transform_indices = @transform_8, window_bounds = array<i64: 128, 1024>}, {pipeline_mode = #tpu.pipeline_mode<synchronous>, transform_indices = @transform_9, window_bounds = array<i64: 1, 1024>}, {pipeline_mode = #tpu.pipeline_mode<synchronous>, transform_indices = @transform_10, window_bounds = array<i64: 1024, 128>}, {pipeline_mode = #tpu.pipeline_mode<synchronous>, transform_indices = @transform_11, window_bounds = array<i64: 1, 128>}, {pipeline_mode = #tpu.pipeline_mode<synchronous>, transform_indices = @transform_12, window_bounds = array<i64: 128, 64>}, {pipeline_mode = #tpu.pipeline_mode<synchronous>, transform_indices = @transform_13, window_bounds = array<i64: 1, 64>}, {pipeline_mode = #tpu.pipeline_mode<synchronous>, transform_indices = @transform_14, window_bounds = array<i64: 64, 128>}, {pipeline_mode = #tpu.pipeline_mode<synchronous>, transform_indices = @transform_15, window_bounds = array<i64: 64, 128>}, {pipeline_mode = #tpu.pipeline_mode<synchronous>, transform_indices = @transform_16, window_bounds = array<i64: 1, 128>}, {pipeline_mode = #tpu.pipeline_mode<synchronous>, transform_indices = @transform_17, window_bounds = array<i64: 128, 128>}, {pipeline_mode = #tpu.pipeline_mode<synchronous>, transform_indices = @transform_18, window_bounds = array<i64: 1, 128>}, {pipeline_mode = #tpu.pipeline_mode<synchronous>, transform_indices = @transform_19, window_bounds = array<i64: 1, 128>}, {transform_indices = @transform_20, window_bounds = array<i64: 8, 1>}]} {
    %c0 = arith.constant 0 : index
    %c0_0 = arith.constant 0 : index
    %0 = vector.load %arg1[%c0, %c0_0] : memref<8x128xbf16, #tpu.memory_space<vmem>>, vector<8x128xbf16>
    %c0_1 = arith.constant 0 : index
    %c0_2 = arith.constant 0 : index
    %1 = vector.load %arg3[%c0_1, %c0_2] : memref<128x1024xbf16, #tpu.memory_space<vmem>>, vector<128x1024xbf16>
    %cst = arith.constant dense<0.000000e+00> : vector<8x1024xf32>
    %2 = tpu.matmul %0, %1, %cst {dimension_numbers = #tpu.dot_dimension_numbers<[1], [0], [0], [1], [0, 0, 1, 1], [], []>} : vector<8x128xbf16>, vector<128x1024xbf16>, vector<8x1024xf32> -> vector<8x1024xf32>
    %c0_3 = arith.constant 0 : index
    %c0_4 = arith.constant 0 : index
    %3 = vector.load %arg4[%c0_3, %c0_4] : memref<1x1024xf32, #tpu.memory_space<vmem>>, vector<1x1024xf32>
    %4 = vector.broadcast %3 : vector<1x1024xf32> to vector<8x1024xf32>
    %5 = arith.addf %2, %4 : vector<8x1024xf32>
    %cst_5 = arith.constant 0.000000e+00 : f32
    %6 = vector.broadcast %cst_5 : f32 to vector<8x1024xf32>
    %7 = arith.maximumf %5, %6 : vector<8x1024xf32>
    %8 = arith.truncf %7 : vector<8x1024xf32> to vector<8x1024xbf16>
    %c0_6 = arith.constant 0 : index
    %c0_7 = arith.constant 0 : index
    %9 = vector.load %arg5[%c0_6, %c0_7] : memref<1024x128xbf16, #tpu.memory_space<vmem>>, vector<1024x128xbf16>
    %cst_8 = arith.constant dense<0.000000e+00> : vector<8x128xf32>
    %10 = tpu.matmul %8, %9, %cst_8 {dimension_numbers = #tpu.dot_dimension_numbers<[1], [0], [0], [1], [0, 0, 1, 1], [], []>} : vector<8x1024xbf16>, vector<1024x128xbf16>, vector<8x128xf32> -> vector<8x128xf32>
    %c0_9 = arith.constant 0 : index
    %c0_10 = arith.constant 0 : index
    %11 = vector.load %arg6[%c0_9, %c0_10] : memref<1x128xf32, #tpu.memory_space<vmem>>, vector<1x128xf32>
    %12 = vector.broadcast %11 : vector<1x128xf32> to vector<8x128xf32>
    %13 = arith.addf %10, %12 : vector<8x128xf32>
    %cst_11 = arith.constant 0.000000e+00 : f32
    %14 = vector.broadcast %cst_11 : f32 to vector<8x128xf32>
    %15 = arith.maximumf %13, %14 : vector<8x128xf32>
    %16 = arith.truncf %15 : vector<8x128xf32> to vector<8x128xbf16>
    %c0_12 = arith.constant 0 : index
    %c0_13 = arith.constant 0 : index
    %17 = vector.load %arg7[%c0_12, %c0_13] : memref<128x64xbf16, #tpu.memory_space<vmem>>, vector<128x64xbf16>
    %cst_14 = arith.constant dense<0.000000e+00> : vector<8x64xf32>
    %18 = tpu.matmul %16, %17, %cst_14 {dimension_numbers = #tpu.dot_dimension_numbers<[1], [0], [0], [1], [0, 0, 1, 1], [], []>} : vector<8x128xbf16>, vector<128x64xbf16>, vector<8x64xf32> -> vector<8x64xf32>
    %c0_15 = arith.constant 0 : index
    %c0_16 = arith.constant 0 : index
    %19 = vector.load %arg8[%c0_15, %c0_16] : memref<1x64xf32, #tpu.memory_space<vmem>>, vector<1x64xf32>
    %20 = vector.broadcast %19 : vector<1x64xf32> to vector<8x64xf32>
    %21 = arith.addf %18, %20 : vector<8x64xf32>
    %22 = arith.truncf %21 : vector<8x64xf32> to vector<8x64xbf16>
    %c0_17 = arith.constant 0 : index
    %c0_18 = arith.constant 0 : index
    %23 = vector.load %arg2[%c0_17, %c0_18] : memref<8x128xbf16, #tpu.memory_space<vmem>>, vector<8x128xbf16>
    %c0_19 = arith.constant 0 : index
    %c0_20 = arith.constant 0 : index
    %24 = vector.load %arg9[%c0_19, %c0_20] : memref<128x1024xbf16, #tpu.memory_space<vmem>>, vector<128x1024xbf16>
    %cst_21 = arith.constant dense<0.000000e+00> : vector<8x1024xf32>
    %25 = tpu.matmul %23, %24, %cst_21 {dimension_numbers = #tpu.dot_dimension_numbers<[1], [0], [0], [1], [0, 0, 1, 1], [], []>} : vector<8x128xbf16>, vector<128x1024xbf16>, vector<8x1024xf32> -> vector<8x1024xf32>
    %c0_22 = arith.constant 0 : index
    %c0_23 = arith.constant 0 : index
    %26 = vector.load %arg10[%c0_22, %c0_23] : memref<1x1024xf32, #tpu.memory_space<vmem>>, vector<1x1024xf32>
    %27 = vector.broadcast %26 : vector<1x1024xf32> to vector<8x1024xf32>
    %28 = arith.addf %25, %27 : vector<8x1024xf32>
    %cst_24 = arith.constant 0.000000e+00 : f32
    %29 = vector.broadcast %cst_24 : f32 to vector<8x1024xf32>
    %30 = arith.maximumf %28, %29 : vector<8x1024xf32>
    %31 = arith.truncf %30 : vector<8x1024xf32> to vector<8x1024xbf16>
    %c0_25 = arith.constant 0 : index
    %c0_26 = arith.constant 0 : index
    %32 = vector.load %arg11[%c0_25, %c0_26] : memref<1024x128xbf16, #tpu.memory_space<vmem>>, vector<1024x128xbf16>
    %cst_27 = arith.constant dense<0.000000e+00> : vector<8x128xf32>
    %33 = tpu.matmul %31, %32, %cst_27 {dimension_numbers = #tpu.dot_dimension_numbers<[1], [0], [0], [1], [0, 0, 1, 1], [], []>} : vector<8x1024xbf16>, vector<1024x128xbf16>, vector<8x128xf32> -> vector<8x128xf32>
    %c0_28 = arith.constant 0 : index
    %c0_29 = arith.constant 0 : index
    %34 = vector.load %arg12[%c0_28, %c0_29] : memref<1x128xf32, #tpu.memory_space<vmem>>, vector<1x128xf32>
    %35 = vector.broadcast %34 : vector<1x128xf32> to vector<8x128xf32>
    %36 = arith.addf %33, %35 : vector<8x128xf32>
    %cst_30 = arith.constant 0.000000e+00 : f32
    %37 = vector.broadcast %cst_30 : f32 to vector<8x128xf32>
    %38 = arith.maximumf %36, %37 : vector<8x128xf32>
    %39 = arith.truncf %38 : vector<8x128xf32> to vector<8x128xbf16>
    %c0_31 = arith.constant 0 : index
    %c0_32 = arith.constant 0 : index
    %40 = vector.load %arg13[%c0_31, %c0_32] : memref<128x64xbf16, #tpu.memory_space<vmem>>, vector<128x64xbf16>
    %cst_33 = arith.constant dense<0.000000e+00> : vector<8x64xf32>
    %41 = tpu.matmul %39, %40, %cst_33 {dimension_numbers = #tpu.dot_dimension_numbers<[1], [0], [0], [1], [0, 0, 1, 1], [], []>} : vector<8x128xbf16>, vector<128x64xbf16>, vector<8x64xf32> -> vector<8x64xf32>
    %c0_34 = arith.constant 0 : index
    %c0_35 = arith.constant 0 : index
    %42 = vector.load %arg14[%c0_34, %c0_35] : memref<1x64xf32, #tpu.memory_space<vmem>>, vector<1x64xf32>
    %43 = vector.broadcast %42 : vector<1x64xf32> to vector<8x64xf32>
    %44 = arith.addf %41, %43 : vector<8x64xf32>
    %45 = arith.truncf %44 : vector<8x64xf32> to vector<8x64xbf16>
    %c0_36 = arith.constant 0 : index
    %c0_37 = arith.constant 0 : index
    %46 = vector.load %arg15[%c0_36, %c0_37] : memref<64x128xbf16, #tpu.memory_space<vmem>>, vector<64x128xbf16>
    %cst_38 = arith.constant dense<0.000000e+00> : vector<8x128xf32>
    %47 = tpu.matmul %22, %46, %cst_38 {dimension_numbers = #tpu.dot_dimension_numbers<[1], [0], [0], [1], [0, 0, 1, 1], [], []>} : vector<8x64xbf16>, vector<64x128xbf16>, vector<8x128xf32> -> vector<8x128xf32>
    %c0_39 = arith.constant 0 : index
    %c0_40 = arith.constant 0 : index
    %48 = vector.load %arg16[%c0_39, %c0_40] : memref<64x128xbf16, #tpu.memory_space<vmem>>, vector<64x128xbf16>
    %cst_41 = arith.constant dense<0.000000e+00> : vector<8x128xf32>
    %49 = tpu.matmul %45, %48, %cst_41 {dimension_numbers = #tpu.dot_dimension_numbers<[1], [0], [0], [1], [0, 0, 1, 1], [], []>} : vector<8x64xbf16>, vector<64x128xbf16>, vector<8x128xf32> -> vector<8x128xf32>
    %50 = arith.addf %47, %49 : vector<8x128xf32>
    %c0_42 = arith.constant 0 : index
    %c0_43 = arith.constant 0 : index
    %51 = vector.load %arg17[%c0_42, %c0_43] : memref<1x128xf32, #tpu.memory_space<vmem>>, vector<1x128xf32>
    %52 = vector.broadcast %51 : vector<1x128xf32> to vector<8x128xf32>
    %53 = arith.addf %50, %52 : vector<8x128xf32>
    %cst_44 = arith.constant 0.000000e+00 : f32
    %54 = vector.broadcast %cst_44 : f32 to vector<8x128xf32>
    %55 = arith.maximumf %53, %54 : vector<8x128xf32>
    %56 = arith.truncf %55 : vector<8x128xf32> to vector<8x128xbf16>
    %c0_45 = arith.constant 0 : index
    %c0_46 = arith.constant 0 : index
    %57 = vector.load %arg18[%c0_45, %c0_46] : memref<128x128xbf16, #tpu.memory_space<vmem>>, vector<128x128xbf16>
    %cst_47 = arith.constant dense<0.000000e+00> : vector<8x128xf32>
    %58 = tpu.matmul %56, %57, %cst_47 {dimension_numbers = #tpu.dot_dimension_numbers<[1], [0], [0], [1], [0, 0, 1, 1], [], []>} : vector<8x128xbf16>, vector<128x128xbf16>, vector<8x128xf32> -> vector<8x128xf32>
    %c0_48 = arith.constant 0 : index
    %c0_49 = arith.constant 0 : index
    %59 = vector.load %arg19[%c0_48, %c0_49] : memref<1x128xf32, #tpu.memory_space<vmem>>, vector<1x128xf32>
    %60 = vector.broadcast %59 : vector<1x128xf32> to vector<8x128xf32>
    %61 = arith.addf %58, %60 : vector<8x128xf32>
    %cst_50 = arith.constant 0.000000e+00 : f32
    %62 = vector.broadcast %cst_50 : f32 to vector<8x128xf32>
    %63 = arith.maximumf %61, %62 : vector<8x128xf32>
    %c0_51 = arith.constant 0 : index
    %c0_52 = arith.constant 0 : index
    %64 = vector.load %arg20[%c0_51, %c0_52] : memref<1x128xf32, #tpu.memory_space<vmem>>, vector<1x128xf32>
    %65 = vector.broadcast %64 : vector<1x128xf32> to vector<8x128xf32>
    %66 = arith.mulf %63, %65 : vector<8x128xf32>
    %cst_53 = arith.constant dense<0.000000e+00> : vector<8xf32>
    %67 = vector.multi_reduction <add>, %66, %cst_53 [1] : vector<8x128xf32> to vector<8xf32>
    %68 = vector.shape_cast %67 : vector<8xf32> to vector<8x1xf32>
    %c0_54 = arith.constant 0 : index
    %c0_55 = arith.constant 0 : index
    %69 = vector.load %arg21[%c0_54, %c0_55] : memref<8x1xf32, #tpu.memory_space<vmem>>, vector<8x1xf32>
    tpu.vector_store %arg21[%c0_54, %c0_55], %68 {strides = array<i32>} : memref<8x1xf32, #tpu.memory_space<vmem>>, vector<8x1xf32>,
    return
  }
  func.func @transform_0(%arg0: i32) -> (i32, i32) {
    %c0_i32 = arith.constant 0 : i32
    %c0_i32_0 = arith.constant 0 : i32
    return %arg0, %c0_i32 : i32, i32
  }
  func.func @transform_1(%arg0: i32) -> (i32, i32) {
    %c0_i32 = arith.constant 0 : i32
    %c0_i32_0 = arith.constant 0 : i32
    return %arg0, %c0_i32 : i32, i32
  }
  func.func @transform_2(%arg0: i32) -> (i32, i32) {
    %c0_i32 = arith.constant 0 : i32
    %c0_i32_0 = arith.constant 0 : i32
    %c0_i32_1 = arith.constant 0 : i32
    return %c0_i32, %c0_i32_0 : i32, i32
  }
  func.func @transform_3(%arg0: i32) -> (i32, i32) {
    %c0_i32 = arith.constant 0 : i32
    %c0_i32_0 = arith.constant 0 : i32
    %c0_i32_1 = arith.constant 0 : i32
    return %c0_i32, %c0_i32_0 : i32, i32
  }
  func.func @transform_4(%arg0: i32) -> (i32, i32) {
    %c0_i32 = arith.constant 0 : i32
    %c0_i32_0 = arith.constant 0 : i32
    %c0_i32_1 = arith.constant 0 : i32
    return %c0_i32, %c0_i32_0 : i32, i32
  }
  func.func @transform_5(%arg0: i32) -> (i32, i32) {
    %c0_i32 = arith.constant 0 : i32
    %c0_i32_0 = arith.constant 0 : i32
    %c0_i32_1 = arith.constant 0 : i32
    return %c0_i32, %c0_i32_0 : i32, i32
  }
  func.func @transform_6(%arg0: i32) -> (i32, i32) {
    %c0_i32 = arith.constant 0 : i32
    %c0_i32_0 = arith.constant 0 : i32
    %c0_i32_1 = arith.constant 0 : i32
    return %c0_i32, %c0_i32_0 : i32, i32
  }
  func.func @transform_7(%arg0: i32) -> (i32, i32) {
    %c0_i32 = arith.constant 0 : i32
    %c0_i32_0 = arith.constant 0 : i32
    %c0_i32_1 = arith.constant 0 : i32
    return %c0_i32, %c0_i32_0 : i32, i32
  }
  func.func @transform_8(%arg0: i32) -> (i32, i32) {
    %c0_i32 = arith.constant 0 : i32
    %c0_i32_0 = arith.constant 0 : i32
    %c0_i32_1 = arith.constant 0 : i32
    return %c0_i32, %c0_i32_0 : i32, i32
  }
  func.func @transform_9(%arg0: i32) -> (i32, i32) {
    %c0_i32 = arith.constant 0 : i32
    %c0_i32_0 = arith.constant 0 : i32
    %c0_i32_1 = arith.constant 0 : i32
    return %c0_i32, %c0_i32_0 : i32, i32
  }
  func.func @transform_10(%arg0: i32) -> (i32, i32) {
    %c0_i32 = arith.constant 0 : i32
    %c0_i32_0 = arith.constant 0 : i32
    %c0_i32_1 = arith.constant 0 : i32
    return %c0_i32, %c0_i32_0 : i32, i32
  }
  func.func @transform_11(%arg0: i32) -> (i32, i32) {
    %c0_i32 = arith.constant 0 : i32
    %c0_i32_0 = arith.constant 0 : i32
    %c0_i32_1 = arith.constant 0 : i32
    return %c0_i32, %c0_i32_0 : i32, i32
  }
  func.func @transform_12(%arg0: i32) -> (i32, i32) {
    %c0_i32 = arith.constant 0 : i32
    %c0_i32_0 = arith.constant 0 : i32
    %c0_i32_1 = arith.constant 0 : i32
    return %c0_i32, %c0_i32_0 : i32, i32
  }
  func.func @transform_13(%arg0: i32) -> (i32, i32) {
    %c0_i32 = arith.constant 0 : i32
    %c0_i32_0 = arith.constant 0 : i32
    %c0_i32_1 = arith.constant 0 : i32
    return %c0_i32, %c0_i32_0 : i32, i32
  }
  func.func @transform_14(%arg0: i32) -> (i32, i32) {
    %c0_i32 = arith.constant 0 : i32
    %c0_i32_0 = arith.constant 0 : i32
    %c0_i32_1 = arith.constant 0 : i32
    return %c0_i32, %c0_i32_0 : i32, i32
  }
  func.func @transform_15(%arg0: i32) -> (i32, i32) {
    %c0_i32 = arith.constant 0 : i32
    %c0_i32_0 = arith.constant 0 : i32
    %c0_i32_1 = arith.constant 0 : i32
    return %c0_i32, %c0_i32_0 : i32, i32
  }
  func.func @transform_16(%arg0: i32) -> (i32, i32) {
    %c0_i32 = arith.constant 0 : i32
    %c0_i32_0 = arith.constant 0 : i32
    %c0_i32_1 = arith.constant 0 : i32
    return %c0_i32, %c0_i32_0 : i32, i32
  }
  func.func @transform_17(%arg0: i32) -> (i32, i32) {
    %c0_i32 = arith.constant 0 : i32
    %c0_i32_0 = arith.constant 0 : i32
    %c0_i32_1 = arith.constant 0 : i32
    return %c0_i32, %c0_i32_0 : i32, i32
  }
  func.func @transform_18(%arg0: i32) -> (i32, i32) {
    %c0_i32 = arith.constant 0 : i32
    %c0_i32_0 = arith.constant 0 : i32
    %c0_i32_1 = arith.constant 0 : i32
    return %c0_i32, %c0_i32_0 : i32, i32
  }
  func.func @transform_19(%arg0: i32) -> (i32, i32) {
    %c0_i32 = arith.constant 0 : i32
    %c0_i32_0 = arith.constant 0 : i32
    %c0_i32_1 = arith.constant 0 : i32
    return %c0_i32, %c0_i32_0 : i32, i32
  }
  func.func @transform_20(%arg0: i32) -> (i32, i32) {
    %c0_i32 = arith.constant 0 : i32
    %c0_i32_0 = arith.constant 0 : i32
    return %arg0, %c0_i32 : i32, i32
  }
}

</mosaic_0001>

<bundles_post_ra>
// kernel: tpu_custom_call.1
= control target key start
LH: loop header
LB: loop body
LE: loop exit
PB: predicated region body
PF: predicated region fallthrough
CT: control target
= control target key end

     0   :  { %s4656_s0 = inlined_call_operand.vmem [shape: bf16[8,128], index: 0, kind: input, shape index: {}]   ;;  %s4657_s1 = inlined_call_operand.vmem [shape: bf16[8,128], index: 1, kind: input, shape index: {}]   ;;  %s4658_s2 = inlined_call_operand.hbm [shape: bf16[128,1024], index: 2, kind: input, shape index: {}]   ;;  %s4659_s3 = inlined_call_operand.vmem [shape: f32[1,1024], index: 3, kind: input, shape index: {}]   ;;  %s4660_s4 = inlined_call_operand.hbm [shape: bf16[1024,128], index: 4, kind: input, shape index: {}]   ;;  %s4661_s5 = inlined_call_operand.vmem [shape: f32[1,128], index: 5, kind: input, shape index: {}]   ;;  %s4662_s6 = inlined_call_operand.vmem [shape: bf16[128,64], index: 6, kind: input, shape index: {}]   ;;  %s4663_s7 = inlined_call_operand.vmem [shape: f32[1,64], index: 7, kind: input, shape index: {}]   ;;  %s4664_s8 = inlined_call_operand.hbm [shape: bf16[128,1024], index: 8, kind: input, shape index: {}]   ;;  %s4665_s9 = inlined_call_operand.vmem [shape: f32[1,1024], index: 9, kind: input, shape index: {}]   ;;  %s4666_s10 = inlined_call_operand.hbm [shape: bf16[1024,128], index: 10, kind: input, shape index: {}]   ;;  %s4667_s11 = inlined_call_operand.vmem [shape: f32[1,128], index: 11, kind: input, shape index: {}]   ;;  %s4668_s12 = inlined_call_operand.vmem [shape: bf16[128,64], index: 12, kind: input, shape index: {}]   ;;  %s4669_s13 = inlined_call_operand.vmem [shape: f32[1,64], index: 13, kind: input, shape index: {}]   ;;  %s4670_s14 = inlined_call_operand.vmem [shape: bf16[64,128], index: 14, kind: input, shape index: {}]   ;;  %s4671_s15 = inlined_call_operand.vmem [shape: bf16[64,128], index: 15, kind: input, shape index: {}]   ;;  %s4672_s16 = inlined_call_operand.vmem [shape: f32[1,128], index: 16, kind: input, shape index: {}]   ;;  %s4673_s17 = inlined_call_operand.vmem [shape: bf16[128,128], index: 17, kind: input, shape index: {}]   ;;  %s4674_s18 = inlined_call_operand.vmem [shape: f32[1,128], index: 18, kind: input, shape index: {}]   ;;  %s4675_s19 = inlined_call_operand.vmem [shape: f32[1,128], index: 19, kind: input, shape index: {}]   ;;  %s4676_s20 = inlined_call_operand.vmem [shape: f32[8,1], index: 20, kind: output, shape index: {}]  }
   0x1   :  { %4677 = sst [smem:[#allocation12_spill]] %s4656_s0 }
   0x2   :  { %4678 = sst [smem:[#allocation13_spill]] %s4657_s1 }
   0x3   :  { %4679 = sst [smem:[#allocation14_spill]] %s4658_s2 }
   0x4   :  { %4680 = sst [smem:[#allocation15_spill]] %s4659_s3 }
   0x5   :  { %4681 = sst [smem:[#allocation16_spill]] %s4660_s4 }
   0x6   :  { %4682 = sst [smem:[#allocation17_spill]] %s4675_s19 }
   0x7   :  { %4683 = sst [smem:[#allocation18_spill]] %s4676_s20 }
   0x8   :  { %25 = vsyncpa [#allocation3], 0 }
   0x9   :  { %26 = vsyncpa [#allocation5], 0  ;;  %s4684_s23 = sld [smem:[#allocation16_spill]] }
   0xf   :  { %s51_s24 = sshll.u32 %s4684_s23, 4  ;;  %s52_s24 = int_to_ptr.hbm [resolvable:$true] %s51_s24 }
  0x10   :  { %27 = vsyncpa [#allocation8], 0  ;;  %s4344_s2 = smov [#allocation4]   ;;  %s4685_s27 = sld [smem:[#allocation14_spill]] }
  0x11   :  { %s53_s25 = sshll.u32 %s4344_s2, 4  ;;  %s4345_s4 = smov 64   ;;  %s54_s25 = int_to_ptr.vmem [resolvable:$true] %s53_s25 }
  0x12   :  { %s4346_s29 = smov 4   ;;  %s4347_s30 = smov [#allocation2]  }
  0x13   :  { %59 = dma.hbm_to_vmem [thread:$0]  %s52_s24, 8192, %s54_s25, [#allocation5], %s4345_s4, %s4345_s4, %s4346_s29  }
  0x14   :  { %s38_s0 = sshll.u32 %s4347_s30, 4  ;;  %s4348_s21 = smov 512   ;;  %s39_s0 = int_to_ptr.vmem [resolvable:$true] %s38_s0 }
  0x15   :  { %s4349_s20 = smov 32   ;;  %s70_s23 = sshll.u32 %s4664_s8, 4  ;;  %s71_s23 = int_to_ptr.hbm [resolvable:$true] %s70_s23 }
  0x16   :  { %s36_s28 = sshll.u32 %s4685_s27, 4  ;;  %s4350_s2 = smov [#allocation6]   ;;  %s37_s28 = int_to_ptr.hbm [resolvable:$true] %s36_s28 }
  0x17   :  { %44 = dma.hbm_to_vmem [thread:$0]  %s37_s28, 8192, %s39_s0, [#allocation3], %s4348_s21, %s4348_s21, %s4349_s20  }
  0x18   :  { %s72_s19 = sshll.u32 %s4350_s2, 4  ;;  %s85_s27 = sshll.u32 %s4666_s10, 4  ;;  %s73_s19 = int_to_ptr.vmem [resolvable:$true] %s72_s19  ;;  %s86_s27 = int_to_ptr.hbm [resolvable:$true] %s85_s27 }
  0x19   :  { %78 = dma.hbm_to_vmem [thread:$0]  %s71_s23, 8192, %s73_s19, [#allocation5], %s4348_s21, %s4348_s21, %s4349_s20  }
  0x1a   :  { %s4351_s24 = smov [#allocation7]  }
  0x1b   :  { %s87_s25 = sshll.u32 %s4351_s24, 4  ;;  %s88_s25 = int_to_ptr.vmem [resolvable:$true] %s87_s25 }
  0x1c   :  { %93 = dma.hbm_to_vmem [thread:$0]  %s86_s27, 8192, %s88_s25, [#allocation8], %s4345_s4, %s4345_s4, %s4346_s29  }
  0x1d   :  { %4338 = dma.done.wait [#allocation3], 8192  }
  0x1e   :  { %4339 = vsyncadd [#allocation3], 4294959104 }
  0x1f   :  { %4340 = dma.done.wait [#allocation5], 16384  }
  0x20   :  { %4341 = vsyncadd [#allocation5], 4294950912 }
  0x21   :  { %4342 = dma.done.wait [#allocation8], 8192  }
  0x22   :  { %4343 = vsyncadd [#allocation8], 4294959104  ;;  %v3011_v0 = vld [vmem:[#allocation2 + $0x1c0] sm:$0xf]  ;;  %v3019_v2 = vld [vmem:[#allocation2 + $0x1c8] sm:$0xf] }
  0x23   :  { %v3999_v1 = vld [vmem:[#allocation2 + $0x1dc] sm:$0xf0]  ;;  %v4000_v4 = vld [vmem:[#allocation2 + $0x1e4] sm:$0xf0]  ;;  %v3996_v5 = vld [vmem:[#allocation2 + $0x1cc] sm:$0xf] }
  0x24   :  { %v3012_v3 = vor.u32 %v3999_v1, %v3011_v0  ;;  %v3021_v6 = vld [vmem:[#allocation2 + $0x1e8] sm:$0xf0]  ;;  %v3020_v7 = vor.u32 %v4000_v4, %v3019_v2  ;;  %v3995_v9 = vld [vmem:[#allocation2 + $0x1c4] sm:$0xf]  ;;  %v2979_v11 = vld [vmem:[#allocation2 + $0x180] sm:$0xf] }
  0x25   :  { %v3024_v8 = vor.u32 %v3996_v5, %v3021_v6  ;;  %v3013_v10 = vld [vmem:[#allocation2 + $0x1e0] sm:$0xf0]  ;;  %v3991_v13 = vld [vmem:[#allocation2 + $0x19c] sm:$0xf0]  ;;  %v2987_v14 = vld [vmem:[#allocation2 + $0x188] sm:$0xf] }
  0x26   :  { %532 = vmatpush.bf16.msra.mxu0 %v3012_v3  ;;  %v3016_v12 = vor.u32 %v3995_v9, %v3013_v10  ;;  %v3992_v15 = vld [vmem:[#allocation2 + $0x1a4] sm:$0xf0]  ;;  %558 = vmatpush.bf16.msra.mxu2 %v3020_v7  ;;  %v2980_v16 = vor.u32 %v3991_v13, %v2979_v11  ;;  %v3988_v18 = vld [vmem:[#allocation2 + $0x18c] sm:$0xf]  ;;  %v3987_v20 = vld [vmem:[#allocation2 + $0x184] sm:$0xf] }
  0x27   :  { %571 = vmatpush.bf16.msra.mxu3 %v3024_v8  ;;  %v2988_v17 = vor.u32 %v3992_v15, %v2987_v14  ;;  %v2989_v19 = vld [vmem:[#allocation2 + $0x1a8] sm:$0xf0]  ;;  %v2981_v22 = vld [vmem:[#allocation2 + $0x1a0] sm:$0xf0]  ;;  %v2947_v23 = vld [vmem:[#allocation2 + $0x140] sm:$0xf] }
  0x28   :  { %545 = vmatpush.bf16.msra.mxu1 %v3016_v12  ;;  %v2992_v21 = vor.u32 %v3988_v18, %v2989_v19  ;;  %v3983_v24 = vld [vmem:[#allocation2 + $0x15c] sm:$0xf0]  ;;  %v2984_v25 = vor.u32 %v3987_v20, %v2981_v22  ;;  %v2955_v26 = vld [vmem:[#allocation2 + $0x148] sm:$0xf]  ;;  %v3980_v28 = vld [vmem:[#allocation2 + $0x14c] sm:$0xf] }
  0x29   :  { %v3984_v27 = vld [vmem:[#allocation2 + $0x164] sm:$0xf0]  ;;  %v2948_v29 = vor.u32 %v3983_v24, %v2947_v23  ;;  %v2957_v30 = vld [vmem:[#allocation2 + $0x168] sm:$0xf0]  ;;  %v3979_v31 = vld [vmem:[#allocation2 + $0x144] sm:$0xf] }
  0x2a   :  { %533 = vmatpush.bf16.msra.mxu0 %v2980_v16  ;;  %v2949_v32 = vld [vmem:[#allocation2 + $0x160] sm:$0xf0]  ;;  %559 = vmatpush.bf16.msra.mxu2 %v2988_v17  ;;  %v2956_v33 = vor.u32 %v3984_v27, %v2955_v26  ;;  %v2960_v34 = vor.u32 %v3980_v28, %v2957_v30  ;;  %v2915_v35 = vld [vmem:[#allocation2 + $0x100] sm:$0xf]  ;;  %v2923_v37 = vld [vmem:[#allocation2 + $0x108] sm:$0xf] }
  0x2b   :  { %572 = vmatpush.bf16.msra.mxu3 %v2992_v21  ;;  %v3975_v36 = vld [vmem:[#allocation2 + $0x11c] sm:$0xf0]  ;;  %v2952_v38 = vor.u32 %v3979_v31, %v2949_v32  ;;  %v3976_v39 = vld [vmem:[#allocation2 + $0x124] sm:$0xf0]  ;;  %v3972_v40 = vld [vmem:[#allocation2 + $0x10c] sm:$0xf] }
  0x2c   :  { %546 = vmatpush.bf16.msra.mxu1 %v2984_v25  ;;  %v2925_v41 = vld [vmem:[#allocation2 + $0x128] sm:$0xf0]  ;;  %v3971_v42 = vld [vmem:[#allocation2 + $0x104] sm:$0xf]  ;;  %v2916_v44 = vor.u32 %v3975_v36, %v2915_v35  ;;  %v2924_v45 = vor.u32 %v3976_v39, %v2923_v37  ;;  %v2883_v47 = vld [vmem:[#allocation2 + $0xc0] sm:$0xf] }
  0x2d   :  { %v2917_v43 = vld [vmem:[#allocation2 + $0x120] sm:$0xf0]  ;;  %v2928_v46 = vor.u32 %v3972_v40, %v2925_v41  ;;  %v3967_v48 = vld [vmem:[#allocation2 + $0xdc] sm:$0xf0]  ;;  %v2891_v49 = vld [vmem:[#allocation2 + $0xc8] sm:$0xf] }
  0x2e   :  { %534 = vmatpush.bf16.msra.mxu0 %v2948_v29  ;;  %560 = vmatpush.bf16.msra.mxu2 %v2956_v33  ;;  %v2920_v50 = vor.u32 %v3971_v42, %v2917_v43  ;;  %v3968_v51 = vld [vmem:[#allocation2 + $0xe4] sm:$0xf0]  ;;  %v3964_v52 = vld [vmem:[#allocation2 + $0xcc] sm:$0xf]  ;;  %v3963_v54 = vld [vmem:[#allocation2 + $0xc4] sm:$0xf]  ;;  %v2884_v56 = vor.u32 %v3967_v48, %v2883_v47 }
  0x2f   :  { %573 = vmatpush.bf16.msra.mxu3 %v2960_v34  ;;  %v2893_v53 = vld [vmem:[#allocation2 + $0xe8] sm:$0xf0]  ;;  %v2885_v55 = vld [vmem:[#allocation2 + $0xe0] sm:$0xf0]  ;;  %v2892_v57 = vor.u32 %v3968_v51, %v2891_v49  ;;  %v2851_v59 = vld [vmem:[#allocation2 + $0x80] sm:$0xf] }
  0x30   :  { %547 = vmatpush.bf16.msra.mxu1 %v2952_v38  ;;  %v2896_v58 = vor.u32 %v3964_v52, %v2893_v53  ;;  %v3959_v60 = vld [vmem:[#allocation2 + $0x9c] sm:$0xf0]  ;;  %v2859_v61 = vld [vmem:[#allocation2 + $0x88] sm:$0xf]  ;;  %v2888_v62 = vor.u32 %v3963_v54, %v2885_v55  ;;  %v3956_v0 = vld [vmem:[#allocation2 + $0x8c] sm:$0xf] }
  0x31   :  { %v3960_v63 = vld [vmem:[#allocation2 + $0xa4] sm:$0xf0]  ;;  %v2861_v1 = vld [vmem:[#allocation2 + $0xa8] sm:$0xf0]  ;;  %v3955_v2 = vld [vmem:[#allocation2 + $0x84] sm:$0xf]  ;;  %v2852_v4 = vor.u32 %v3959_v60, %v2851_v59 }
  0x32   :  { %535 = vmatpush.bf16.msra.mxu0 %v2916_v44  ;;  %561 = vmatpush.bf16.msra.mxu2 %v2924_v45  ;;  %v2853_v3 = vld [vmem:[#allocation2 + $0xa0] sm:$0xf0]  ;;  %v2860_v5 = vor.u32 %v3960_v63, %v2859_v61  ;;  %v2864_v6 = vor.u32 %v3956_v0, %v2861_v1  ;;  %v2819_v7 = vld [vmem:[#allocation2 + $0x40] sm:$0xf]  ;;  %v2827_v9 = vld [vmem:[#allocation2 + $0x48] sm:$0xf] }
  0x33   :  { %574 = vmatpush.bf16.msra.mxu3 %v2928_v46  ;;  %v3951_v8 = vld [vmem:[#allocation2 + $0x5c] sm:$0xf0]  ;;  %v2856_v10 = vor.u32 %v3955_v2, %v2853_v3  ;;  %v3952_v11 = vld [vmem:[#allocation2 + $0x64] sm:$0xf0]  ;;  %v3948_v12 = vld [vmem:[#allocation2 + $0x4c] sm:$0xf] }
  0x34   :  { %548 = vmatpush.bf16.msra.mxu1 %v2920_v50  ;;  %v2829_v13 = vld [vmem:[#allocation2 + $0x68] sm:$0xf0]  ;;  %v3947_v14 = vld [vmem:[#allocation2 + $0x44] sm:$0xf]  ;;  %v2820_v16 = vor.u32 %v3951_v8, %v2819_v7  ;;  %v2787_v17 = vld [vmem:[#allocation2] sm:$0xf]  ;;  %v2828_v19 = vor.u32 %v3952_v11, %v2827_v9 }
  0x35   :  { %v2821_v15 = vld [vmem:[#allocation2 + $0x60] sm:$0xf0]  ;;  %v3943_v18 = vld [vmem:[#allocation2 + $0x1c] sm:$0xf0]  ;;  %v2832_v20 = vor.u32 %v3948_v12, %v2829_v13  ;;  %v2795_v21 = vld [vmem:[#allocation2 + $0x8] sm:$0xf] }
  0x36   :  { %536 = vmatpush.bf16.msra.mxu0 %v2884_v56  ;;  %562 = vmatpush.bf16.msra.mxu2 %v2892_v57  ;;  %v3944_v22 = vld [vmem:[#allocation2 + $0x24] sm:$0xf0]  ;;  %v3940_v23 = vld [vmem:[#allocation2 + $0xc] sm:$0xf]  ;;  %v2824_v24 = vor.u32 %v3947_v14, %v2821_v15  ;;  %v3027_v26 = vld [vmem:[#allocation2 + $0x1d0] sm:$0xf]  ;;  %v2788_v31 = vor.u32 %v3943_v18, %v2787_v17 }
  0x37   :  { %575 = vmatpush.bf16.msra.mxu3 %v2896_v58  ;;  %v2797_v25 = vld [vmem:[#allocation2 + $0x28] sm:$0xf0]  ;;  %v4001_v27 = vld [vmem:[#allocation2 + $0x1ec] sm:$0xf0]  ;;  %v3035_v28 = vld [vmem:[#allocation2 + $0x1d8] sm:$0xf]  ;;  %v2796_v35 = vor.u32 %v3944_v22, %v2795_v21 }
  0x38   :  { %549 = vmatpush.bf16.msra.mxu1 %v2888_v62  ;;  %v4002_v29 = vld [vmem:[#allocation2 + $0x1f4] sm:$0xf0]  ;;  %v3998_v30 = vld [vmem:[#allocation2 + $0x1dc] sm:$0xf]  ;;  %v3939_v33 = vld [vmem:[#allocation2 + $0x4] sm:$0xf]  ;;  %v2800_v36 = vor.u32 %v3940_v23, %v2797_v25  ;;  %v3028_v39 = vor.u32 %v4001_v27, %v3027_v26 }
  0x39   :  { %v3037_v32 = vld [vmem:[#allocation2 + $0x1f8] sm:$0xf0]  ;;  %v2789_v34 = vld [vmem:[#allocation2 + $0x20] sm:$0xf0]  ;;  %v3997_v37 = vld [vmem:[#allocation2 + $0x1d4] sm:$0xf]  ;;  %v3036_v40 = vor.u32 %v4002_v29, %v3035_v28 }
  0x3a   :  { %537 = vmatpush.bf16.msra.mxu0 %v2852_v4  ;;  %563 = vmatpush.bf16.msra.mxu2 %v2860_v5  ;;  %v3029_v38 = vld [vmem:[#allocation2 + $0x1f0] sm:$0xf0]  ;;  %v2995_v41 = vld [vmem:[#allocation2 + $0x190] sm:$0xf]  ;;  %v3040_v42 = vor.u32 %v3998_v30, %v3037_v32  ;;  %v2792_v43 = vor.u32 %v3939_v33, %v2789_v34  ;;  %v3003_v45 = vld [vmem:[#allocation2 + $0x198] sm:$0xf] }
  0x3b   :  { %576 = vmatpush.bf16.msra.mxu3 %v2864_v6  ;;  %v3993_v44 = vld [vmem:[#allocation2 + $0x1ac] sm:$0xf0]  ;;  %v3994_v46 = vld [vmem:[#allocation2 + $0x1b4] sm:$0xf0]  ;;  %v3032_v47 = vor.u32 %v3997_v37, %v3029_v38  ;;  %v3990_v48 = vld [vmem:[#allocation2 + $0x19c] sm:$0xf] }
  0x3c   :  { %550 = vmatpush.bf16.msra.mxu1 %v2856_v10  ;;  %v3005_v49 = vld [vmem:[#allocation2 + $0x1b8] sm:$0xf0]  ;;  %v3989_v50 = vld [vmem:[#allocation2 + $0x194] sm:$0xf]  ;;  %s4686_s19 = sld [smem:[#allocation12_spill]]  ;;  %v2996_v53 = vor.u32 %v3993_v44, %v2995_v41  ;;  %v3004_v54 = vor.u32 %v3994_v46, %v3003_v45  ;;  %vm2623_vm0 = vcmask 523264  }
  0x3d   :  { %v2997_v51 = vld [vmem:[#allocation2 + $0x1b0] sm:$0xf0]  ;;  %v2963_v55 = vld [vmem:[#allocation2 + $0x150] sm:$0xf]  ;;  %v3008_v56 = vor.u32 %v3990_v48, %v3005_v49  ;;  %v2971_v58 = vld [vmem:[#allocation2 + $0x158] sm:$0xf] }
  0x3e   :  { %538 = vmatpush.bf16.msra.mxu0 %v2820_v16  ;;  %564 = vmatpush.bf16.msra.mxu2 %v2828_v19  ;;  %v3985_v57 = vld [vmem:[#allocation2 + $0x16c] sm:$0xf0]  ;;  %v3986_v59 = vld [vmem:[#allocation2 + $0x174] sm:$0xf0]  ;;  %v3000_v60 = vor.u32 %v3989_v50, %v2997_v51  ;;  %v3982_v61 = vld [vmem:[#allocation2 + $0x15c] sm:$0xf] }
  0x3f   :  { %577 = vmatpush.bf16.msra.mxu3 %v2832_v20  ;;  %v2973_v62 = vld [vmem:[#allocation2 + $0x178] sm:$0xf0]  ;;  %v3981_v63 = vld [vmem:[#allocation2 + $0x154] sm:$0xf]  ;;  %v2964_v1 = vor.u32 %v3985_v57, %v2963_v55  ;;  %v2972_v2 = vor.u32 %v3986_v59, %v2971_v58  ;;  %v2931_v3 = vld [vmem:[#allocation2 + $0x110] sm:$0xf] }
  0x40   :  { %551 = vmatpush.bf16.msra.mxu1 %v2824_v24  ;;  %v2965_v0 = vld [vmem:[#allocation2 + $0x170] sm:$0xf0]  ;;  %v2976_v4 = vor.u32 %v3982_v61, %v2973_v62  ;;  %v3977_v5 = vld [vmem:[#allocation2 + $0x12c] sm:$0xf0]  ;;  %v2939_v6 = vld [vmem:[#allocation2 + $0x118] sm:$0xf] }
  0x41   :  { %v3978_v7 = vld [vmem:[#allocation2 + $0x134] sm:$0xf0]  ;;  %v2968_v8 = vor.u32 %v3981_v63, %v2965_v0  ;;  %v3974_v9 = vld [vmem:[#allocation2 + $0x11c] sm:$0xf]  ;;  %v3973_v11 = vld [vmem:[#allocation2 + $0x114] sm:$0xf]  ;;  %v2932_v13 = vor.u32 %v3977_v5, %v2931_v3 }
  0x42   :  { %539 = vmatpush.bf16.msra.mxu0 %v2788_v31  ;;  %565 = vmatpush.bf16.msra.mxu2 %v2796_v35  ;;  %v4472_v52 = vld [vmem:[%s4686_s19] sm:$0xf]  ;;  %v2941_v10 = vld [vmem:[#allocation2 + $0x138] sm:$0xf0]  ;;  %v2933_v12 = vld [vmem:[#allocation2 + $0x130] sm:$0xf0]  ;;  %v2940_v14 = vor.u32 %v3978_v7, %v2939_v6 }
  0x43   :  { %578 = vmatpush.bf16.msra.mxu3 %v2800_v36  ;;  %v2899_v15 = vld [vmem:[#allocation2 + $0xd0] sm:$0xf]  ;;  %v2944_v16 = vor.u32 %v3974_v9, %v2941_v10  ;;  %v2907_v18 = vld [vmem:[#allocation2 + $0xd8] sm:$0xf]  ;;  %v2936_v20 = vor.u32 %v3973_v11, %v2933_v12  ;;  %v3966_v21 = vld [vmem:[#allocation2 + $0xdc] sm:$0xf] }
  0x44   :  { %552 = vmatpush.bf16.msra.mxu1 %v2792_v43  ;;  %v3969_v17 = vld [vmem:[#allocation2 + $0xec] sm:$0xf0]  ;;  %v3970_v19 = vld [vmem:[#allocation2 + $0xf4] sm:$0xf0]  ;;  %v2909_v22 = vld [vmem:[#allocation2 + $0xf8] sm:$0xf0] }
  0x45   :  { %566 = vmatmul.bf16.vlgmr.msra.gmra.mxu2 %v4472_v52  ;;  %540 = vmatmul.bf16.vlgmr.msra.gmra.mxu0 %v4472_v52  ;;  %v3965_v23 = vld [vmem:[#allocation2 + $0xd4] sm:$0xf]  ;;  %v2900_v25 = vor.u32 %v3969_v17, %v2899_v15  ;;  %v2908_v26 = vor.u32 %v3970_v19, %v2907_v18  ;;  %v2867_v27 = vld [vmem:[#allocation2 + $0x90] sm:$0xf]  ;;  %v2912_v29 = vor.u32 %v3966_v21, %v2909_v22  ;;  %v2875_v30 = vld [vmem:[#allocation2 + $0x98] sm:$0xf] }
  0x46   :  { %584 = vmatpush.bf16.msrb.mxu0 %v3028_v39  ;;  %610 = vmatpush.bf16.msrb.mxu2 %v3036_v40  ;;  %v2901_v24 = vld [vmem:[#allocation2 + $0xf0] sm:$0xf0]  ;;  %v3961_v28 = vld [vmem:[#allocation2 + $0xac] sm:$0xf0]  ;;  %v3962_v31 = vld [vmem:[#allocation2 + $0xb4] sm:$0xf0] }
  0x47   :  { %623 = vmatpush.bf16.msrb.mxu3 %v3040_v42  ;;  %553 = vmatmul.bf16.vlgmr.msra.gmra.mxu1 %v4472_v52  ;;  %v3958_v32 = vld [vmem:[#allocation2 + $0x9c] sm:$0xf]  ;;  %v2904_v33 = vor.u32 %v3965_v23, %v2901_v24  ;;  %v3957_v35 = vld [vmem:[#allocation2 + $0x94] sm:$0xf]  ;;  %v2835_v37 = vld [vmem:[#allocation2 + $0x50] sm:$0xf]  ;;  %v2868_v39 = vor.u32 %v3961_v28, %v2867_v27  ;;  %v2876_v40 = vor.u32 %v3962_v31, %v2875_v30 }
  0x48   :  { %597 = vmatpush.bf16.msrb.mxu1 %v3032_v47  ;;  %579 = vmatmul.bf16.vlgmr.msra.gmra.mxu3 %v4472_v52  ;;  %v2877_v34 = vld [vmem:[#allocation2 + $0xb8] sm:$0xf0]  ;;  %v2869_v36 = vld [vmem:[#allocation2 + $0xb0] sm:$0xf0]  ;;  %v3953_v38 = vld [vmem:[#allocation2 + $0x6c] sm:$0xf0] }
  0x49   :  { %v2843_v41 = vld [vmem:[#allocation2 + $0x58] sm:$0xf]  ;;  %v3950_v43 = vld [vmem:[#allocation2 + $0x5c] sm:$0xf]  ;;  %v2880_v44 = vor.u32 %v3958_v32, %v2877_v34  ;;  %v2872_v46 = vor.u32 %v3957_v35, %v2869_v36  ;;  %v3949_v47 = vld [vmem:[#allocation2 + $0x54] sm:$0xf]  ;;  %v2836_v49 = vor.u32 %v3953_v38, %v2835_v37 }
  0x4a   :  { %585 = vmatpush.bf16.msrb.mxu0 %v2996_v53  ;;  %611 = vmatpush.bf16.msrb.mxu2 %v3004_v54  ;;  %v3954_v42 = vld [vmem:[#allocation2 + $0x74] sm:$0xf0]  ;;  %v2845_v45 = vld [vmem:[#allocation2 + $0x78] sm:$0xf0]  ;;  %v2837_v48 = vld [vmem:[#allocation2 + $0x70] sm:$0xf0] }
  0x4b   :  { %624 = vmatpush.bf16.msrb.mxu3 %v3008_v56  ;;  %v2844_v50 = vor.u32 %v3954_v42, %v2843_v41  ;;  %v2803_v51 = vld [vmem:[#allocation2 + $0x10] sm:$0xf]  ;;  %v2848_v53 = vor.u32 %v3950_v43, %v2845_v45  ;;  %v2811_v55 = vld [vmem:[#allocation2 + $0x18] sm:$0xf]  ;;  %v2840_v57 = vor.u32 %v3949_v47, %v2837_v48  ;;  %v3942_v58 = vld [vmem:[#allocation2 + $0x1c] sm:$0xf] }
  0x4c   :  { %598 = vmatpush.bf16.msrb.mxu1 %v3000_v60  ;;  %v3945_v54 = vld [vmem:[#allocation2 + $0x2c] sm:$0xf0]  ;;  %v3946_v56 = vld [vmem:[#allocation2 + $0x34] sm:$0xf0]  ;;  %v2813_v59 = vld [vmem:[#allocation2 + $0x38] sm:$0xf0] }
  0x4d   :  { %v3941_v60 = vld [vmem:[#allocation2 + $0x14] sm:$0xf]  ;;  %v2804_v62 = vor.u32 %v3945_v54, %v2803_v51  ;;  %v2812_v63 = vor.u32 %v3946_v56, %v2811_v55  ;;  %v2816_v0 = vor.u32 %v3942_v58, %v2813_v59  ;;  %v4026_v3 = vld [vmem:[#allocation4 + $0xb8] sm:$0xff]  ;;  %v4008_v9 = vld [vmem:[#allocation4 + $0x28] sm:$0xff]  ;;  %s4687_s4 = sld [smem:[#allocation15_spill]]  ;;  %vm2776_vm1 = vcmask 7168  }
  0x4e   :  { %586 = vmatpush.bf16.msrb.mxu0 %v2964_v1  ;;  %612 = vmatpush.bf16.msrb.mxu2 %v2972_v2  ;;  %v2805_v61 = vld [vmem:[#allocation2 + $0x30] sm:$0xf0]  ;;  %v4010_v1 = vld [vmem:[#allocation4 + $0x38] sm:$0xff]  ;;  %v4024_v11 = vld [vmem:[#allocation4 + $0xa8] sm:$0xff]  ;;  %s4688_s28 = sld [smem:[#allocation13_spill]] }
  0x4f   :  { %625 = vmatpush.bf16.msrb.mxu3 %v2976_v4  ;;  %v2808_v2 = vor.u32 %v3941_v60, %v2805_v61  ;;  %v4018_v4 = vld [vmem:[#allocation4 + $0x78] sm:$0xff]  ;;  %v4009_v5 = vld [vmem:[#allocation4 + $0x30] sm:$0xff]  ;;  %v4016_v12 = vld [vmem:[#allocation4 + $0x68] sm:$0xff]  ;;  %s4689_s3 = sld [smem:[#allocation17_spill]] }
  0x50   :  { %599 = vmatpush.bf16.msrb.mxu1 %v2968_v8  ;;  %v4034_v6 = vld [vmem:[#allocation4 + $0xf8] sm:$0xff]  ;;  %v4025_v7 = vld [vmem:[#allocation4 + $0xb0] sm:$0xff]  ;;  %v4023_v15 = vld [vmem:[#allocation4 + $0xa0] sm:$0xff]  ;;  %s4690_s27 = sld [smem:[#allocation18_spill]] }
  0x51   :  { %v4017_v8 = vld [vmem:[#allocation4 + $0x70] sm:$0xff]  ;;  %v4006_v17 = vld [vmem:[#allocation4 + $0x18] sm:$0xff]  ;;  %v4004_v24 = vld [vmem:[#allocation4 + $0x8] sm:$0xff] }
  0x52   :  { %587 = vmatpush.bf16.msrb.mxu0 %v2932_v13  ;;  %613 = vmatpush.bf16.msrb.mxu2 %v2940_v14  ;;  %v4033_v10 = vld [vmem:[#allocation4 + $0xf0] sm:$0xff]  ;;  %v4007_v13 = vld [vmem:[#allocation4 + $0x20] sm:$0xff]  ;;  %v4032_v14 = vld [vmem:[#allocation4 + $0xe8] sm:$0xff] }
  0x53   :  { %626 = vmatpush.bf16.msrb.mxu3 %v2944_v16  ;;  %v4015_v16 = vld [vmem:[#allocation4 + $0x60] sm:$0xff]  ;;  %v4022_v18 = vld [vmem:[#allocation4 + $0x98] sm:$0xff]  ;;  %v4021_v22 = vld [vmem:[#allocation4 + $0x90] sm:$0xff] }
  0x54   :  { %600 = vmatpush.bf16.msrb.mxu1 %v2936_v20  ;;  %v4014_v19 = vld [vmem:[#allocation4 + $0x58] sm:$0xff]  ;;  %v4005_v20 = vld [vmem:[#allocation4 + $0x10] sm:$0xff]  ;;  %v4012_v27 = vld [vmem:[#allocation4 + $0x48] sm:$0xff] }
  0x55   :  { %v4030_v21 = vld [vmem:[#allocation4 + $0xd8] sm:$0xff]  ;;  %v4013_v23 = vld [vmem:[#allocation4 + $0x50] sm:$0xff]  ;;  %v4003_v28 = vld [vmem:[#allocation4] sm:$0xff] }
  0x56   :  { %588 = vmatpush.bf16.msrb.mxu0 %v2900_v25  ;;  %614 = vmatpush.bf16.msrb.mxu2 %v2908_v26  ;;  %v4029_v25 = vld [vmem:[#allocation4 + $0xd0] sm:$0xff]  ;;  %v4020_v26 = vld [vmem:[#allocation4 + $0x88] sm:$0xff]  ;;  %v4019_v31 = vld [vmem:[#allocation4 + $0x80] sm:$0xff] }
  0x57   :  { %627 = vmatpush.bf16.msrb.mxu3 %v2912_v29  ;;  %v4042_v29 = vld [vmem:[#allocation4 + $0x138] sm:$0xff]  ;;  %v4028_v30 = vld [vmem:[#allocation4 + $0xc8] sm:$0xff]  ;;  %v4011_v32 = vld [vmem:[#allocation4 + $0x40] sm:$0xff] }
  0x58   :  { %601 = vmatpush.bf16.msrb.mxu1 %v2904_v33  ;;  %v4050_v33 = vld [vmem:[#allocation4 + $0x178] sm:$0xff]  ;;  %v4041_v34 = vld [vmem:[#allocation4 + $0x130] sm:$0xff]  ;;  %v4027_v35 = vld [vmem:[#allocation4 + $0xc0] sm:$0xff] }
  0x59   :  { %v4049_v36 = vld [vmem:[#allocation4 + $0x170] sm:$0xff]  ;;  %v4058_v37 = vld [vmem:[#allocation4 + $0x1b8] sm:$0xff]  ;;  %v4039_v43 = vld [vmem:[#allocation4 + $0x120] sm:$0xff] }
  0x5a   :  { %589 = vmatpush.bf16.msrb.mxu0 %v2868_v39  ;;  %615 = vmatpush.bf16.msrb.mxu2 %v2876_v40  ;;  %v4066_v38 = vld [vmem:[#allocation4 + $0x1f8] sm:$0xff]  ;;  %v4040_v39 = vld [vmem:[#allocation4 + $0x128] sm:$0xff]  ;;  %v4057_v41 = vld [vmem:[#allocation4 + $0x1b0] sm:$0xff] }
  0x5b   :  { %628 = vmatpush.bf16.msrb.mxu3 %v2880_v44  ;;  %v4048_v40 = vld [vmem:[#allocation4 + $0x168] sm:$0xff]  ;;  %v4065_v42 = vld [vmem:[#allocation4 + $0x1f0] sm:$0xff]  ;;  %v4047_v44 = vld [vmem:[#allocation4 + $0x160] sm:$0xff] }
  0x5c   :  { %602 = vmatpush.bf16.msrb.mxu1 %v2872_v46  ;;  %v4056_v45 = vld [vmem:[#allocation4 + $0x1a8] sm:$0xff]  ;;  %v4038_v47 = vld [vmem:[#allocation4 + $0x118] sm:$0xff]  ;;  %v4037_v51 = vld [vmem:[#allocation4 + $0x110] sm:$0xff] }
  0x5d   :  { %v4064_v46 = vld [vmem:[#allocation4 + $0x1e8] sm:$0xff]  ;;  %v4046_v48 = vld [vmem:[#allocation4 + $0x158] sm:$0xff]  ;;  %v4053_v60 = vld [vmem:[#allocation4 + $0x190] sm:$0xff] }
  0x5e   :  { %590 = vmatpush.bf16.msrb.mxu0 %v2836_v49  ;;  %616 = vmatpush.bf16.msrb.mxu2 %v2844_v50  ;;  %v4055_v49 = vld [vmem:[#allocation4 + $0x1a0] sm:$0xff]  ;;  %v4054_v54 = vld [vmem:[#allocation4 + $0x198] sm:$0xff]  ;;  %v4036_v56 = vld [vmem:[#allocation4 + $0x108] sm:$0xff] }
  0x5f   :  { %629 = vmatpush.bf16.msrb.mxu3 %v2848_v53  ;;  %v4063_v50 = vld [vmem:[#allocation4 + $0x1e0] sm:$0xff]  ;;  %v4045_v53 = vld [vmem:[#allocation4 + $0x150] sm:$0xff]  ;;  %v4062_v55 = vld [vmem:[#allocation4 + $0x1d8] sm:$0xff] }
  0x60   :  { %603 = vmatpush.bf16.msrb.mxu1 %v2840_v57  ;;  %v4485_v57 = vld [vmem:[%s4687_s4] sm:$0xff]  ;;  %v4044_v59 = vld [vmem:[#allocation4 + $0x148] sm:$0xff]  ;;  %v4061_v61 = vld [vmem:[#allocation4 + $0x1d0] sm:$0xff] }
  0x61   :  { %v196_v58 = vperm.slane %v4485_v57, 0 }
  0x62   :  { %591 = vmatpush.bf16.msrb.mxu0 %v2804_v62  ;;  %617 = vmatpush.bf16.msrb.mxu2 %v2812_v63  ;;  %v197_v62 = vperm.slane %v4485_v57, 1  ;;  %v4035_v63 = vld [vmem:[#allocation4 + $0x100] sm:$0xff] }
  0x63   :  { %630 = vmatpush.bf16.msrb.mxu3 %v2816_v0 }
  0x64   :  { %604 = vmatpush.bf16.msrb.mxu1 %v2808_v2  ;;  %v4043_v2 = vld [vmem:[#allocation4 + $0x140] sm:$0xff] }
  0x65   :  { %592 = vmatmul.bf16.vlgmr.msrb.gmra.mxu0 %v4472_v52  ;;  %618 = vmatmul.bf16.vlgmr.msrb.gmra.mxu2 %v4472_v52 }
  0x66   :  { %1168 = vmatpush.bf16.msra.mxu0 %v4010_v1  ;;  %1194 = vmatpush.bf16.msra.mxu2 %v4026_v3  ;;  %v4052_v3 = vld [vmem:[#allocation4 + $0x188] sm:$0xff] }
  0x67   :  { %631 = vmatmul.bf16.vlgmr.msrb.gmra.mxu3 %v4472_v52  ;;  %605 = vmatmul.bf16.vlgmr.msrb.gmra.mxu1 %v4472_v52  ;;  %v4031_v52 = vld [vmem:[#allocation4 + $0xe0] sm:$0xff] }
  0x68   :  { %1181 = vmatpush.bf16.msra.mxu1 %v4018_v4  ;;  %1207 = vmatpush.bf16.msra.mxu3 %v4034_v6  ;;  %v4060_v4 = vld [vmem:[#allocation4 + $0x1c8] sm:$0xff] }
  0x6a   :  { %1169 = vmatpush.bf16.msra.mxu0 %v4009_v5  ;;  %1195 = vmatpush.bf16.msra.mxu2 %v4025_v7  ;;  %v198_v5 = vperm.slane %v4485_v57, 2 }
  0x6c   :  { %1182 = vmatpush.bf16.msra.mxu1 %v4017_v8  ;;  %1208 = vmatpush.bf16.msra.mxu3 %v4033_v10  ;;  %v199_v8 = vperm.slane %v4485_v57, 3 }
  0x6e   :  { %1170 = vmatpush.bf16.msra.mxu0 %v4008_v9  ;;  %1196 = vmatpush.bf16.msra.mxu2 %v4024_v11 }
  0x70   :  { %1183 = vmatpush.bf16.msra.mxu1 %v4016_v12  ;;  %1209 = vmatpush.bf16.msra.mxu3 %v4032_v14  ;;  %v4059_v14 = vld [vmem:[#allocation4 + $0x1c0] sm:$0xff] }
  0x72   :  { %1171 = vmatpush.bf16.msra.mxu0 %v4007_v13  ;;  %1197 = vmatpush.bf16.msra.mxu2 %v4023_v15  ;;  %v4051_v13 = vld [vmem:[#allocation4 + $0x180] sm:$0xff] }
  0x74   :  { %1184 = vmatpush.bf16.msra.mxu1 %v4015_v16  ;;  %1210 = vmatpush.bf16.msra.mxu3 %v4031_v52 }
  0x76   :  { %1172 = vmatpush.bf16.msra.mxu0 %v4006_v17  ;;  %1198 = vmatpush.bf16.msra.mxu2 %v4022_v18 }
  0x78   :  { %1185 = vmatpush.bf16.msra.mxu1 %v4014_v19  ;;  %1211 = vmatpush.bf16.msra.mxu3 %v4030_v21 }
  0x7a   :  { %1173 = vmatpush.bf16.msra.mxu0 %v4005_v20  ;;  %1199 = vmatpush.bf16.msra.mxu2 %v4021_v22 }
  0x7c   :  { %1186 = vmatpush.bf16.msra.mxu1 %v4013_v23  ;;  %1212 = vmatpush.bf16.msra.mxu3 %v4029_v25  ;;  %v4131_v25 = vld [vmem:[#allocation6 + $0x1c4] sm:$0xf] }
  0x7e   :  { %1174 = vmatpush.bf16.msra.mxu0 %v4004_v24  ;;  %1200 = vmatpush.bf16.msra.mxu2 %v4020_v26  ;;  %v4074_v24 = vld [vmem:[%s4662_s6 + $0x38] sm:$0xff]  ;;  %v3557_v26 = vld [vmem:[#allocation6 + $0x1e0] sm:$0xf0] }
  0x80   :  { %1187 = vmatpush.bf16.msra.mxu1 %v4012_v27  ;;  %1213 = vmatpush.bf16.msra.mxu3 %v4028_v30  ;;  %v3563_v27 = vld [vmem:[#allocation6 + $0x1c8] sm:$0xf]  ;;  %v4073_v30 = vld [vmem:[%s4662_s6 + $0x30] sm:$0xff] }
  0x82   :  { %1175 = vmatpush.bf16.msra.mxu0 %v4003_v28  ;;  %1201 = vmatpush.bf16.msra.mxu2 %v4019_v31  ;;  %v4136_v28 = vld [vmem:[#allocation6 + $0x1e4] sm:$0xf0]  ;;  %v3560_v31 = vor.u32 %v4131_v25, %v3557_v26  ;;  %v3491_v25 = vld [vmem:[#allocation6 + $0x140] sm:$0xf] }
  0x83   :  { %v4119_v26 = vld [vmem:[#allocation6 + $0x15c] sm:$0xf0] }
  0x84   :  { %1188 = vmatpush.bf16.msra.mxu1 %v4011_v32  ;;  %1214 = vmatpush.bf16.msra.mxu3 %v4027_v35  ;;  %v3564_v32 = vor.u32 %v4136_v28, %v3563_v27  ;;  %v3435_v27 = vld [vmem:[#allocation6 + $0xc8] sm:$0xf]  ;;  %v3492_v28 = vor.u32 %v4119_v26, %v3491_v25  ;;  %v3509_v25 = vld [vmem:[#allocation6 + $0x170] sm:$0xf0]  ;;  %v3331_v26 = vld [vmem:[#allocation6] sm:$0xf] }
  0x86   :  { %1220 = vmatpush.bf16.msrb.mxu0 %v4042_v29  ;;  %1246 = vmatpush.bf16.msrb.mxu2 %v4058_v37  ;;  %v4128_v37 = vld [vmem:[#allocation6 + $0x1a4] sm:$0xf0] }
  0x88   :  { %1233 = vmatpush.bf16.msrb.mxu1 %v4050_v33  ;;  %1259 = vmatpush.bf16.msrb.mxu3 %v4066_v38  ;;  %v4123_v33 = vld [vmem:[#allocation6 + $0x184] sm:$0xf] }
  0x8a   :  { %1221 = vmatpush.bf16.msrb.mxu0 %v4041_v34  ;;  %1247 = vmatpush.bf16.msrb.mxu2 %v4057_v41  ;;  %v3525_v34 = vld [vmem:[#allocation6 + $0x1a0] sm:$0xf0] }
  0x8b   :  { %v3528_v38 = vor.u32 %v4123_v33, %v3525_v34  ;;  %v3493_v41 = vld [vmem:[#allocation6 + $0x160] sm:$0xf0] }
  0x8c   :  { %1234 = vmatpush.bf16.msrb.mxu1 %v4049_v36  ;;  %1260 = vmatpush.bf16.msrb.mxu3 %v4065_v42  ;;  %v3531_v36 = vld [vmem:[#allocation6 + $0x188] sm:$0xf]  ;;  %v3555_v42 = vld [vmem:[#allocation6 + $0x1c0] sm:$0xf]  ;;  %v3397_v33 = vld [vmem:[#allocation6 + $0xa0] sm:$0xf0] }
  0x8e   :  { %1222 = vmatpush.bf16.msrb.mxu0 %v4040_v39  ;;  %1248 = vmatpush.bf16.msrb.mxu2 %v4056_v45  ;;  %v3532_v39 = vor.u32 %v4128_v37, %v3531_v36  ;;  %v4120_v45 = vld [vmem:[#allocation6 + $0x164] sm:$0xf0]  ;;  %v4111_v36 = vld [vmem:[#allocation6 + $0x11c] sm:$0xf0] }
  0x8f   :  { %v3403_v37 = vld [vmem:[#allocation6 + $0x88] sm:$0xf] }
  0x90   :  { %1235 = vmatpush.bf16.msrb.mxu1 %v4048_v40  ;;  %1261 = vmatpush.bf16.msrb.mxu3 %v4064_v46  ;;  %v4115_v40 = vld [vmem:[#allocation6 + $0x144] sm:$0xf]  ;;  %v4072_v46 = vld [vmem:[%s4662_s6 + $0x28] sm:$0xff] }
  0x92   :  { %1223 = vmatpush.bf16.msrb.mxu0 %v4039_v43  ;;  %1249 = vmatpush.bf16.msrb.mxu2 %v4055_v49  ;;  %v4135_v43 = vld [vmem:[#allocation6 + $0x1dc] sm:$0xf0] }
  0x93   :  { %v4127_v49 = vld [vmem:[#allocation6 + $0x19c] sm:$0xf0] }
  0x94   :  { %1236 = vmatpush.bf16.msrb.mxu1 %v4047_v44  ;;  %1262 = vmatpush.bf16.msrb.mxu3 %v4063_v50  ;;  %v3499_v44 = vld [vmem:[#allocation6 + $0x148] sm:$0xf]  ;;  %v3496_v50 = vor.u32 %v4115_v40, %v3493_v41  ;;  %v4067_v40 = vld [vmem:[%s4662_s6] sm:$0xff] }
  0x95   :  { %v4083_v41 = vld [vmem:[#allocation6 + $0x44] sm:$0xf] }
  0x96   :  { %1224 = vmatpush.bf16.msrb.mxu0 %v4038_v47  ;;  %1250 = vmatpush.bf16.msrb.mxu2 %v4054_v54  ;;  %v3556_v47 = vor.u32 %v4135_v43, %v3555_v42  ;;  %v3461_v54 = vld [vmem:[#allocation6 + $0x120] sm:$0xf0] }
  0x97   :  { %v3365_v43 = vld [vmem:[#allocation6 + $0x60] sm:$0xf0] }
  0x98   :  { %1237 = vmatpush.bf16.msrb.mxu1 %v4046_v48  ;;  %1263 = vmatpush.bf16.msrb.mxu3 %v4062_v55  ;;  %v3523_v48 = vld [vmem:[#allocation6 + $0x180] sm:$0xf] }
  0x99   :  { %v3524_v55 = vor.u32 %v4127_v49, %v3523_v48  ;;  %v3427_v48 = vld [vmem:[#allocation6 + $0xc0] sm:$0xf] }
  0x9a   :  { %1225 = vmatpush.bf16.msrb.mxu0 %v4037_v51  ;;  %1251 = vmatpush.bf16.msrb.mxu2 %v4053_v60  ;;  %v3500_v51 = vor.u32 %v4120_v45, %v3499_v44  ;;  %v4132_v44 = vld [vmem:[#allocation6 + $0x1cc] sm:$0xf]  ;;  %v4103_v49 = vld [vmem:[#allocation6 + $0xdc] sm:$0xf0] }
  0x9b   :  { %v3565_v45 = vld [vmem:[#allocation6 + $0x1e8] sm:$0xf0] }
  0x9c   :  { %1238 = vmatpush.bf16.msrb.mxu1 %v4045_v53  ;;  %1264 = vmatpush.bf16.msrb.mxu3 %v4061_v61  ;;  %v4107_v53 = vld [vmem:[#allocation6 + $0x104] sm:$0xf] }
  0x9d   :  { %v3464_v60 = vor.u32 %v4107_v53, %v3461_v54  ;;  %v4088_v53 = vld [vmem:[#allocation6 + $0x64] sm:$0xf0] }
  0x9e   :  { %1226 = vmatpush.bf16.msrb.mxu0 %v4036_v56  ;;  %1252 = vmatpush.bf16.msrb.mxu2 %v4052_v3  ;;  %v3467_v56 = vld [vmem:[#allocation6 + $0x108] sm:$0xf] }
  0xa0   :  { %1239 = vmatpush.bf16.msrb.mxu1 %v4044_v59  ;;  %1265 = vmatpush.bf16.msrb.mxu3 %v4060_v4  ;;  %v4071_v59 = vld [vmem:[%s4662_s6 + $0x20] sm:$0xff] }
  0xa2   :  { %1227 = vmatpush.bf16.msrb.mxu0 %v4035_v63  ;;  %1253 = vmatpush.bf16.msrb.mxu2 %v4051_v13  ;;  %v4070_v63 = vld [vmem:[%s4662_s6 + $0x18] sm:$0xff] }
  0xa4   :  { %1240 = vmatpush.bf16.msrb.mxu1 %v4043_v2  ;;  %1266 = vmatpush.bf16.msrb.mxu3 %v4059_v14 }
  0xc2   :  { %v541_v0 = vpop.f32.mrf.mxu0 }
  0xc3   :  { %v542_v1 = vadd.f32 %v541_v0, %v196_v58  ;;  %v4112_v58 = vld [vmem:[#allocation6 + $0x124] sm:$0xf0]  ;;  %v201_v0 = vperm.slane %v4485_v57, 5 }
  0xc4   :  { %v554_v6 = vpop.f32.mrf.mxu1  ;;  %v3468_v61 = vor.u32 %v4112_v58, %v3467_v56  ;;  %v3333_v56 = vld [vmem:[#allocation6 + $0x20] sm:$0xf0]  ;;  %v4124_v58 = vld [vmem:[#allocation6 + $0x18c] sm:$0xf] }
  0xc5   :  { %v636_v7 = vmax.f32 %v542_v1, 0.0  ;;  %v555_v9 = vadd.f32 %v554_v6, %v197_v62  ;;  %v200_v62 = vperm.slane %v4485_v57, 4  ;;  %v202_v6 = vperm.slane %v4485_v57, 6 }
  0xc7   :  { %v644_v11 = vpack.c.bf16 %v636_v7, %v636_v7  ;;  %v637_v12 = vmax.f32 %v555_v9, 0.0  ;;  %v203_v7 = vperm.slane %v4485_v57, 7  ;;  %v4069_v57 = vld [vmem:[%s4662_s6 + $0x10] sm:$0xff] }
  0xc8   :  { %v567_v10 = vpop.f32.mrf.mxu2 }
  0xc9   :  { %v568_v15 = vadd.f32 %v567_v10, %v198_v5  ;;  %v645_v52 = vpack.c.bf16 %v637_v12, %v637_v12  ;;  %1176 = vmatmul.bf16.vlgmr.msra.gmra.mxu0 %v644_v11 }
  0xca   :  { %v543_v19 = vpop.f32.mrf.mxu0  ;;  %1342 = vmatpush.bf16.msra.mxu0 %v4074_v24 }
  0xcb   :  { %v580_v16 = vpop.f32.mrf.mxu3  ;;  %v638_v18 = vmax.f32 %v568_v15, 0.0  ;;  %1189 = vmatmul.bf16.vlgmr.msra.gmra.mxu1 %v645_v52 }
  0xcc   :  { %v581_v17 = vadd.f32 %v580_v16, %v199_v8  ;;  %v556_v22 = vpop.f32.mrf.mxu1  ;;  %1759 = vmatpush.bf16.msra.mxu1 %v3556_v47  ;;  %v3568_v47 = vor.u32 %v4132_v44, %v3565_v45  ;;  %v4129_v44 = vld [vmem:[#allocation6 + $0x1ac] sm:$0xf0]  ;;  %v3483_v45 = vld [vmem:[#allocation6 + $0x118] sm:$0xf] }
  0xcd   :  { %v646_v21 = vpack.c.bf16 %v638_v18, %v638_v18  ;;  %v4099_v22 = vld [vmem:[#allocation6 + $0xc4] sm:$0xf] }
  0xce   :  { %v639_v20 = vmax.f32 %v581_v17, 0.0  ;;  %1343 = vmatpush.bf16.msra.mxu0 %v4073_v30 }
  0xcf   :  { %1202 = vmatmul.bf16.vlgmr.msra.gmra.mxu2 %v646_v21 }
  0xd0   :  { %v647_v23 = vpack.c.bf16 %v639_v20, %v639_v20  ;;  %v569_v29 = vpop.f32.mrf.mxu2  ;;  %1772 = vmatpush.bf16.msra.mxu2 %v3560_v31  ;;  %1760 = vmatpush.bf16.msra.mxu1 %v3524_v55  ;;  %v4068_v31 = vld [vmem:[%s4662_s6 + $0x8] sm:$0xff]  ;;  %v4075_v55 = vld [vmem:[#allocation6 + $0x4] sm:$0xf] }
  0xd1   :  { %v4104_v29 = vld [vmem:[#allocation6 + $0xe4] sm:$0xf0] }
  0xd2   :  { %1215 = vmatmul.bf16.vlgmr.msra.gmra.mxu3 %v647_v23  ;;  %1344 = vmatpush.bf16.msra.mxu0 %v4072_v46  ;;  %v3429_v23 = vld [vmem:[#allocation6 + $0xe0] sm:$0xf0]  ;;  %v3436_v30 = vor.u32 %v4104_v29, %v3435_v27  ;;  %v3368_v46 = vor.u32 %v4083_v41, %v3365_v43  ;;  %v4079_v27 = vld [vmem:[#allocation6 + $0x1c] sm:$0xf0]  ;;  %v3477_v41 = vld [vmem:[#allocation6 + $0x130] sm:$0xf0] }
  0xd3   :  { %v582_v35 = vpop.f32.mrf.mxu3  ;;  %1785 = vmatpush.bf16.msra.mxu3 %v3564_v32  ;;  %v3432_v24 = vor.u32 %v4099_v22, %v3429_v23  ;;  %v4091_v32 = vld [vmem:[#allocation6 + $0x84] sm:$0xf]  ;;  %v4117_v22 = vld [vmem:[#allocation6 + $0x154] sm:$0xf]  ;;  %v3332_v29 = vor.u32 %v4079_v27, %v3331_v26  ;;  %v3539_v43 = vld [vmem:[#allocation6 + $0x190] sm:$0xf] }
  0xd4   :  { %1773 = vmatpush.bf16.msra.mxu2 %v3528_v38  ;;  %1761 = vmatpush.bf16.msra.mxu1 %v3492_v28  ;;  %v3400_v34 = vor.u32 %v4091_v32, %v3397_v33  ;;  %v3459_v35 = vld [vmem:[#allocation6 + $0x100] sm:$0xf]  ;;  %v3512_v28 = vor.u32 %v4117_v22, %v3509_v25  ;;  %v4137_v32 = vld [vmem:[#allocation6 + $0x1ec] sm:$0xf0]  ;;  %v3515_v33 = vld [vmem:[#allocation6 + $0x158] sm:$0xf] }
  0xd5   :  { %v3460_v38 = vor.u32 %v4111_v36, %v3459_v35  ;;  %v4122_v35 = vld [vmem:[#allocation6 + $0x174] sm:$0xf0]  ;;  %v4100_v36 = vld [vmem:[#allocation6 + $0xcc] sm:$0xf]  ;;  %v4105_v22 = vld [vmem:[#allocation6 + $0xec] sm:$0xf0] }
  0xd6   :  { %1345 = vmatpush.bf16.msra.mxu0 %v4071_v59  ;;  %v3336_v59 = vor.u32 %v4075_v55, %v3333_v56  ;;  %v3445_v55 = vld [vmem:[#allocation6 + $0xf0] sm:$0xf0]  ;;  %v4526_v56 = vld [vmem:[%s4688_s28] sm:$0xf] }
  0xd7   :  { %1786 = vmatpush.bf16.msra.mxu3 %v3532_v39  ;;  %v4096_v39 = vld [vmem:[#allocation6 + $0xa4] sm:$0xf0] }
  0xd8   :  { %1774 = vmatpush.bf16.msra.mxu2 %v3496_v50  ;;  %v3404_v42 = vor.u32 %v4096_v39, %v3403_v37  ;;  %1762 = vmatpush.bf16.msra.mxu1 %v3460_v38  ;;  %v3371_v50 = vld [vmem:[#allocation6 + $0x48] sm:$0xf]  ;;  %v3437_v37 = vld [vmem:[#allocation6 + $0xe8] sm:$0xf0]  ;;  %v3516_v38 = vor.u32 %v4122_v35, %v3515_v33  ;;  %v3411_v35 = vld [vmem:[#allocation6 + $0x90] sm:$0xf] }
  0xd9   :  { %v3372_v54 = vor.u32 %v4088_v53, %v3371_v50  ;;  %v3440_v39 = vor.u32 %v4100_v36, %v3437_v37  ;;  %v4097_v36 = vld [vmem:[#allocation6 + $0xac] sm:$0xf0]  ;;  %v3355_v37 = vld [vmem:[#allocation6 + $0x18] sm:$0xf] }
  0xda   :  { %1346 = vmatpush.bf16.msra.mxu0 %v4070_v63 }
  0xdb   :  { %1787 = vmatpush.bf16.msra.mxu3 %v3500_v51  ;;  %v3428_v51 = vor.u32 %v4103_v49, %v3427_v48  ;;  %v4092_v48 = vld [vmem:[#allocation6 + $0x8c] sm:$0xf] }
  0xdc   :  { %1775 = vmatpush.bf16.msra.mxu2 %v3464_v60  ;;  %v3533_v60 = vld [vmem:[#allocation6 + $0x1a8] sm:$0xf0] }
  0xdd   :  { %1763 = vmatpush.bf16.msra.mxu1 %v3428_v51  ;;  %v3536_v63 = vor.u32 %v4124_v58, %v3533_v60  ;;  %v3405_v49 = vld [vmem:[#allocation6 + $0xa8] sm:$0xf0]  ;;  %v3507_v60 = vld [vmem:[#allocation6 + $0x150] sm:$0xf] }
  0xde   :  { %1347 = vmatpush.bf16.msra.mxu0 %v4069_v57  ;;  %v3469_v57 = vld [vmem:[#allocation6 + $0x128] sm:$0xf0]  ;;  %v3408_v53 = vor.u32 %v4092_v48, %v3405_v49 }
  0xdf   :  { %1788 = vmatpush.bf16.msra.mxu3 %v3468_v61  ;;  %v4133_v61 = vld [vmem:[#allocation6 + $0x1d4] sm:$0xf] }
  0xe0   :  { %1776 = vmatpush.bf16.msra.mxu2 %v3432_v24 }
  0xe2   :  { %v593_v1 = vpop.f32.mrf.mxu0  ;;  %1348 = vmatpush.bf16.msra.mxu0 %v4068_v31  ;;  %v3571_v31 = vld [vmem:[#allocation6 + $0x1d0] sm:$0xf] }
  0xe3   :  { %v594_v2 = vadd.f32 %v593_v1, %v200_v62  ;;  %1789 = vmatpush.bf16.msra.mxu3 %v3436_v30  ;;  %v3573_v62 = vld [vmem:[#allocation6 + $0x1f0] sm:$0xf0]  ;;  %v3395_v1 = vld [vmem:[#allocation6 + $0x80] sm:$0xf] }
  0xe4   :  { %v606_v3 = vpop.f32.mrf.mxu1  ;;  %1777 = vmatpush.bf16.msra.mxu2 %v3400_v34  ;;  %v3572_v34 = vor.u32 %v4137_v32, %v3571_v31  ;;  %v3349_v31 = vld [vmem:[#allocation6 + $0x30] sm:$0xf0] }
  0xe5   :  { %v640_v4 = vmax.f32 %v594_v2, 0.0  ;;  %v607_v5 = vadd.f32 %v606_v3, %v201_v0  ;;  %v3576_v0 = vor.u32 %v4133_v61, %v3573_v62  ;;  %v4095_v2 = vld [vmem:[#allocation6 + $0x9c] sm:$0xf0]  ;;  %v3339_v3 = vld [vmem:[#allocation6 + $0x8] sm:$0xf] }
  0xe6   :  { %1349 = vmatpush.bf16.msra.mxu0 %v4067_v40  ;;  %v4109_v40 = vld [vmem:[#allocation6 + $0x114] sm:$0xf]  ;;  %v4121_v61 = vld [vmem:[#allocation6 + $0x16c] sm:$0xf0]  ;;  %v3451_v62 = vld [vmem:[#allocation6 + $0xd8] sm:$0xf] }
  0xe7   :  { %v648_v8 = vpack.c.bf16 %v640_v4, %v640_v4  ;;  %v641_v9 = vmax.f32 %v607_v5, 0.0  ;;  %1790 = vmatpush.bf16.msra.mxu3 %v3404_v42  ;;  %v3396_v4 = vor.u32 %v4095_v2, %v3395_v1  ;;  %v4080_v5 = vld [vmem:[#allocation6 + $0x24] sm:$0xf0]  ;;  %v3480_v42 = vor.u32 %v4109_v40, %v3477_v41  ;;  %v4106_v1 = vld [vmem:[#allocation6 + $0xf4] sm:$0xf0] }
  0xe8   :  { %v619_v10 = vpop.f32.mrf.mxu2  ;;  %1778 = vmatpush.bf16.msra.mxu2 %v3368_v46  ;;  %v3540_v46 = vor.u32 %v4129_v44, %v3539_v43  ;;  %v4084_v2 = vld [vmem:[#allocation6 + $0x4c] sm:$0xf]  ;;  %v3379_v41 = vld [vmem:[#allocation6 + $0x50] sm:$0xf] }
  0xe9   :  { %v649_v11 = vpack.c.bf16 %v641_v9, %v641_v9  ;;  %v620_v12 = vadd.f32 %v619_v10, %v202_v6  ;;  %1228 = vmatmul.bf16.vlgmr.msrb.gmra.mxu0 %v648_v8  ;;  %v3340_v6 = vor.u32 %v4080_v5, %v3339_v3  ;;  %1764 = vmatpush.bf16.msra.mxu1 %v3396_v4  ;;  %v4138_v8 = vld [vmem:[#allocation6 + $0x1f4] sm:$0xf0]  ;;  %v4116_v10 = vld [vmem:[#allocation6 + $0x14c] sm:$0xf] }
  0xea   :  { %v632_v13 = vpop.f32.mrf.mxu3  ;;  %v595_v15 = vpop.f32.mrf.mxu0  ;;  %1798 = vmatpush.bf16.msrb.mxu0 %v3568_v47  ;;  %v4114_v47 = vld [vmem:[#allocation6 + $0x134] sm:$0xf0]  ;;  %v3373_v3 = vld [vmem:[#allocation6 + $0x68] sm:$0xf0]  ;;  %v3452_v5 = vor.u32 %v4106_v1, %v3451_v62  ;;  %v3581_v62 = vld [vmem:[#allocation6 + $0x1f8] sm:$0xf0] }
  0xeb   :  { %v633_v14 = vadd.f32 %v632_v13, %v203_v7  ;;  %v642_v16 = vmax.f32 %v620_v12, 0.0  ;;  %1241 = vmatmul.bf16.vlgmr.msrb.gmra.mxu1 %v649_v11  ;;  %1791 = vmatpush.bf16.msra.mxu3 %v3372_v54  ;;  %v3579_v7 = vld [vmem:[#allocation6 + $0x1d8] sm:$0xf]  ;;  %v3501_v11 = vld [vmem:[#allocation6 + $0x168] sm:$0xf0]  ;;  %v3484_v51 = vor.u32 %v4114_v47, %v3483_v45 }
  0xec   :  { %v608_v52 = vpop.f32.mrf.mxu1  ;;  %1779 = vmatpush.bf16.msra.mxu2 %v3336_v59  ;;  %v3580_v9 = vor.u32 %v4138_v8, %v3579_v7  ;;  %v3504_v12 = vor.u32 %v4116_v10, %v3501_v11  ;;  %v4125_v13 = vld [vmem:[#allocation6 + $0x194] sm:$0xf]  ;;  %v3475_v11 = vld [vmem:[#allocation6 + $0x110] sm:$0xf] }
  0xed   :  { %v643_v17 = vmax.f32 %v633_v14, 0.0  ;;  %v650_v18 = vpack.c.bf16 %v642_v16, %v642_v16  ;;  %v3541_v14 = vld [vmem:[#allocation6 + $0x1b0] sm:$0xf0]  ;;  %v3363_v16 = vld [vmem:[#allocation6 + $0x40] sm:$0xf] }
  0xee   :  { %1799 = vmatpush.bf16.msrb.mxu0 %v3536_v63  ;;  %v3544_v15 = vor.u32 %v4125_v13, %v3541_v14  ;;  %v4101_v54 = vld [vmem:[#allocation6 + $0xd4] sm:$0xf]  ;;  %v3419_v13 = vld [vmem:[#allocation6 + $0x98] sm:$0xf]  ;;  %v3347_v47 = vld [vmem:[#allocation6 + $0x10] sm:$0xf] }
  0xef   :  { %v651_v19 = vpack.c.bf16 %v643_v17, %v643_v17  ;;  %1254 = vmatmul.bf16.vlgmr.msrb.gmra.mxu2 %v650_v18  ;;  %1792 = vmatpush.bf16.msra.mxu3 %v3340_v6  ;;  %v4087_v17 = vld [vmem:[#allocation6 + $0x5c] sm:$0xf0]  ;;  %v3547_v18 = vld [vmem:[#allocation6 + $0x198] sm:$0xf]  ;;  %v3448_v58 = vor.u32 %v4101_v54, %v3445_v55  ;;  %v3376_v6 = vor.u32 %v4084_v2, %v3373_v3  ;;  %v4093_v7 = vld [vmem:[#allocation6 + $0x94] sm:$0xf] }
  0xf0   :  { %v621_v20 = vpop.f32.mrf.mxu2  ;;  %1824 = vmatpush.bf16.msrb.mxu2 %v3576_v0  ;;  %v3364_v52 = vor.u32 %v4087_v17, %v3363_v16  ;;  %v3508_v0 = vor.u32 %v4121_v61, %v3507_v60  ;;  %v3413_v8 = vld [vmem:[#allocation6 + $0xb0] sm:$0xf0]  ;;  %v4076_v16 = vld [vmem:[#allocation6 + $0xc] sm:$0xf]  ;;  %v4134_v61 = vld [vmem:[#allocation6 + $0x1dc] sm:$0xf] }
  0xf1   :  { %1267 = vmatmul.bf16.vlgmr.msrb.gmra.mxu3 %v651_v19  ;;  %v4130_v19 = vld [vmem:[#allocation6 + $0x1b4] sm:$0xf0]  ;;  %v3416_v10 = vor.u32 %v4093_v7, %v3413_v8  ;;  %v3341_v17 = vld [vmem:[#allocation6 + $0x28] sm:$0xf0]  ;;  %v4126_v2 = vld [vmem:[#allocation6 + $0x19c] sm:$0xf] }
  0xf2   :  { %v634_v21 = vpop.f32.mrf.mxu3  ;;  %1800 = vmatpush.bf16.msrb.mxu0 %v3504_v12  ;;  %v3548_v20 = vor.u32 %v4130_v19, %v3547_v18  ;;  %1765 = vmatpush.bf16.msra.mxu1 %v3364_v52  ;;  %v4113_v12 = vld [vmem:[#allocation6 + $0x12c] sm:$0xf0]  ;;  %v3344_v18 = vor.u32 %v4076_v16, %v3341_v17  ;;  %v4085_v19 = vld [vmem:[#allocation6 + $0x54] sm:$0xf]  ;;  %v3549_v3 = vld [vmem:[#allocation6 + $0x1b8] sm:$0xf0] }
  0xf3   :  { %1837 = vmatpush.bf16.msrb.mxu3 %v3580_v9  ;;  %v4108_v21 = vld [vmem:[#allocation6 + $0x10c] sm:$0xf]  ;;  %v4235_v9 = vld [vmem:[%s4661_s5] ss:$0 sm:$0xff]  ;;  %v3476_v14 = vor.u32 %v4113_v12, %v3475_v11  ;;  %v4162_v7 = vld [vmem:[#allocation7 + $0xb8] sm:$0xff] }
  0xf4   :  { %1825 = vmatpush.bf16.msrb.mxu2 %v3544_v15  ;;  %v3472_v24 = vor.u32 %v4108_v21, %v3469_v57  ;;  %v4098_v15 = vld [vmem:[#allocation6 + $0xb4] sm:$0xf0]  ;;  %v3443_v57 = vld [vmem:[#allocation6 + $0xd0] sm:$0xf]  ;;  %v3517_v11 = vld [vmem:[#allocation6 + $0x178] sm:$0xf0] }
  0xf5   :  { %v3420_v52 = vor.u32 %v4098_v15, %v3419_v13  ;;  %v3444_v27 = vor.u32 %v4105_v22, %v3443_v57  ;;  %v4146_v8 = vld [vmem:[#allocation7 + $0x38] sm:$0xff]  ;;  %v4153_v12 = vld [vmem:[#allocation7 + $0x70] sm:$0xff]  ;;  %v4151_v22 = vld [vmem:[#allocation7 + $0x60] sm:$0xff] }
  0xf6   :  { %1801 = vmatpush.bf16.msrb.mxu0 %v3472_v24  ;;  %1766 = vmatpush.bf16.msra.mxu1 %v3332_v29  ;;  %v3387_v24 = vld [vmem:[#allocation6 + $0x58] sm:$0xf]  ;;  %v4077_v29 = vld [vmem:[#allocation6 + $0x14] sm:$0xf]  ;;  %v4110_v16 = vld [vmem:[#allocation6 + $0x11c] sm:$0xf] }
  0xf7   :  { %1838 = vmatpush.bf16.msrb.mxu3 %v3548_v20  ;;  %v3381_v20 = vld [vmem:[#allocation6 + $0x70] sm:$0xf0]  ;;  %v3485_v17 = vld [vmem:[#allocation6 + $0x138] sm:$0xf0] }
  0xf8   :  { %1826 = vmatpush.bf16.msrb.mxu2 %v3512_v28  ;;  %v3384_v21 = vor.u32 %v4085_v19, %v3381_v20  ;;  %v4090_v28 = vld [vmem:[#allocation6 + $0x74] sm:$0xf0]  ;;  %v4161_v13 = vld [vmem:[#allocation7 + $0xb0] sm:$0xff]  ;;  %v4144_v19 = vld [vmem:[#allocation7 + $0x28] sm:$0xff]  ;;  %v3488_v20 = vor.u32 %v4110_v16, %v3485_v17 }
  0xf9   :  { %v3388_v33 = vor.u32 %v4090_v28, %v3387_v24  ;;  %v3453_v57 = vld [vmem:[#allocation6 + $0xf8] sm:$0xf0]  ;;  %v4159_v24 = vld [vmem:[#allocation7 + $0xa0] sm:$0xff] }
  0xfa   :  { %1811 = vmatpush.bf16.msrb.mxu1 %v3572_v34  ;;  %1802 = vmatpush.bf16.msrb.mxu0 %v3440_v39  ;;  %v3352_v34 = vor.u32 %v4077_v29, %v3349_v31  ;;  %v3412_v39 = vor.u32 %v4097_v36, %v3411_v35  ;;  %v3421_v28 = vld [vmem:[#allocation6 + $0xb8] sm:$0xf0]  ;;  %v4149_v36 = vld [vmem:[#allocation7 + $0x50] sm:$0xff] }
  0xfb   :  { %1839 = vmatpush.bf16.msrb.mxu3 %v3516_v38  ;;  %1767 = vmatmul.bf16.vlgmr.msra.gmra.mxu1 %v4526_v56  ;;  %v4150_v29 = vld [vmem:[#allocation7 + $0x58] sm:$0xff] }
  0xfc   :  { %1827 = vmatpush.bf16.msrb.mxu2 %v3480_v42  ;;  %v4089_v42 = vld [vmem:[#allocation6 + $0x6c] sm:$0xf0]  ;;  %v4158_v31 = vld [vmem:[#allocation7 + $0x98] sm:$0xff] }
  0xfd   :  { %v3380_v44 = vor.u32 %v4089_v42, %v3379_v41  ;;  %v3389_v35 = vld [vmem:[#allocation6 + $0x78] sm:$0xf0]  ;;  %v4148_v41 = vld [vmem:[#allocation7 + $0x48] sm:$0xff] }
  0xfe   :  { %1812 = vmatpush.bf16.msrb.mxu1 %v3540_v46  ;;  %1803 = vmatpush.bf16.msrb.mxu0 %v3408_v53  ;;  %v4156_v42 = vld [vmem:[#allocation7 + $0x88] sm:$0xff] }
  0xff   :  { %1840 = vmatpush.bf16.msrb.mxu3 %v3484_v51  ;;  %1780 = vmatmul.bf16.vlgmr.msra.gmra.mxu2 %v4526_v56 }
 0x100   :  { %1828 = vmatpush.bf16.msrb.mxu2 %v3448_v58 }
 0x101   :  { %1793 = vmatmul.bf16.vlgmr.msra.gmra.mxu3 %v4526_v56 }
 0x102   :  { %1813 = vmatpush.bf16.msrb.mxu1 %v3508_v0  ;;  %1804 = vmatpush.bf16.msrb.mxu0 %v3376_v6  ;;  %v3584_v0 = vor.u32 %v4134_v61, %v3581_v62  ;;  %v4154_v6 = vld [vmem:[#allocation7 + $0x78] sm:$0xff]  ;;  %v4184_v61 = vld [vmem:[#allocation7 + $0x168] sm:$0xff]  ;;  %v4165_v62 = vld [vmem:[#allocation7 + $0xd0] sm:$0xff] }
 0x103   :  { %1841 = vmatpush.bf16.msrb.mxu3 %v3452_v5 }
 0x104   :  { %1829 = vmatpush.bf16.msrb.mxu2 %v3416_v10  ;;  %v4118_v10 = vld [vmem:[#allocation6 + $0x15c] sm:$0xf] }
 0x105   :  { %v3520_v15 = vor.u32 %v4118_v10, %v3517_v11  ;;  %v4164_v10 = vld [vmem:[#allocation7 + $0xc8] sm:$0xff] }
 0x106   :  { %1814 = vmatpush.bf16.msrb.mxu1 %v3476_v14  ;;  %1805 = vmatpush.bf16.msrb.mxu0 %v3344_v18  ;;  %v4145_v14 = vld [vmem:[#allocation7 + $0x30] sm:$0xff]  ;;  %v4160_v18 = vld [vmem:[#allocation7 + $0xa8] sm:$0xff] }
 0x107   :  { %1842 = vmatpush.bf16.msrb.mxu3 %v3420_v52  ;;  %v4152_v52 = vld [vmem:[#allocation7 + $0x68] sm:$0xff] }
 0x108   :  { %1830 = vmatpush.bf16.msrb.mxu2 %v3384_v21  ;;  %v4102_v21 = vld [vmem:[#allocation6 + $0xdc] sm:$0xf] }
 0x10a   :  { %1815 = vmatpush.bf16.msrb.mxu1 %v3444_v27  ;;  %v4094_v27 = vld [vmem:[#allocation6 + $0x9c] sm:$0xf] }
 0x10b   :  { %1843 = vmatpush.bf16.msrb.mxu3 %v3388_v33  ;;  %v3424_v33 = vor.u32 %v4094_v27, %v3421_v28  ;;  %v4189_v27 = vld [vmem:[#allocation7 + $0x190] sm:$0xff] }
 0x10c   :  { %1831 = vmatpush.bf16.msrb.mxu2 %v3352_v34  ;;  %v4086_v34 = vld [vmem:[#allocation6 + $0x5c] sm:$0xf]  ;;  %v4201_v28 = vld [vmem:[#allocation7 + $0x1f0] sm:$0xff] }
 0x10e   :  { %1816 = vmatpush.bf16.msrb.mxu1 %v3412_v39  ;;  %v3392_v39 = vor.u32 %v4086_v34, %v3389_v35  ;;  %v4188_v35 = vld [vmem:[#allocation7 + $0x188] sm:$0xff] }
 0x10f   :  { %1832 = vmatmul.bf16.vlgmr.msrb.gmra.mxu2 %v4526_v56 }
 0x110   :  { %2408 = vmatpush.bf16.msra.mxu2 %v4154_v6  ;;  %v4183_v6 = vld [vmem:[#allocation7 + $0x160] sm:$0xff] }
 0x112   :  { %1817 = vmatpush.bf16.msrb.mxu1 %v3380_v44 }
 0x114   :  { %2409 = vmatpush.bf16.msra.mxu2 %v4153_v12  ;;  %v4191_v12 = vld [vmem:[#allocation7 + $0x1a0] sm:$0xff] }
 0x118   :  { %2410 = vmatpush.bf16.msra.mxu2 %v4152_v52  ;;  %v4163_v52 = vld [vmem:[#allocation7 + $0xc0] sm:$0xff] }
 0x11c   :  { %2411 = vmatpush.bf16.msra.mxu2 %v4151_v22 }
 0x120   :  { %2412 = vmatpush.bf16.msra.mxu2 %v4150_v29 }
 0x124   :  { %2413 = vmatpush.bf16.msra.mxu2 %v4149_v36  ;;  %v4200_v36 = vld [vmem:[#allocation7 + $0x1e8] sm:$0xff] }
 0x128   :  { %2414 = vmatpush.bf16.msra.mxu2 %v4148_v41 }
 0x146   :  { %v4519_v23 = vpop.f32.mrf.mxu0 }
 0x147   :  { %v1178_v25 = vadd.f32 %v4235_v9, %v4519_v23  ;;  %v4082_v23 = vld [vmem:[#allocation6 + $0x34] sm:$0xf0]  ;;  %v3552_v9 = vor.u32 %v4126_v2, %v3549_v3 }
 0x148   :  { %v4521_v30 = vpop.f32.mrf.mxu1  ;;  %v3356_v40 = vor.u32 %v4082_v23, %v3355_v37  ;;  %v4157_v37 = vld [vmem:[#allocation7 + $0x90] sm:$0xff]  ;;  %v4078_v23 = vld [vmem:[#allocation6 + $0x1c] sm:$0xf] }
 0x149   :  { %v1191_v38 = vadd.f32 %v4521_v30, %v1178_v25  ;;  %v4081_v30 = vld [vmem:[#allocation6 + $0x2c] sm:$0xf0]  ;;  %v4143_v25 = vld [vmem:[#allocation7 + $0x20] sm:$0xff] }
 0x14a   :  { %1844 = vmatpush.bf16.msrb.mxu3 %v3356_v40  ;;  %v3348_v49 = vor.u32 %v4081_v30, %v3347_v47  ;;  %v3357_v40 = vld [vmem:[#allocation6 + $0x38] sm:$0xf0]  ;;  %v4155_v30 = vld [vmem:[#allocation7 + $0x80] sm:$0xff] }
 0x14b   :  { %v3360_v44 = vor.u32 %v4078_v23, %v3357_v40  ;;  %v4186_v47 = vld [vmem:[#allocation7 + $0x178] sm:$0xff]  ;;  %v4179_v23 = vld [vmem:[#allocation7 + $0x140] sm:$0xff] }
 0x14c   :  { %1818 = vmatpush.bf16.msrb.mxu1 %v3348_v49  ;;  %v4139_v49 = vld [vmem:[#allocation7] sm:$0xff] }
 0x14d   :  { %1845 = vmatmul.bf16.vlgmr.msrb.gmra.mxu3 %v4526_v56 }
 0x14e   :  { %v1179_v50 = vpop.f32.mrf.mxu0  ;;  %2421 = vmatpush.bf16.msra.mxu3 %v4162_v7 }
 0x14f   :  { %1819 = vmatmul.bf16.vlgmr.msrb.gmra.mxu1 %v4526_v56 }
 0x150   :  { %v1192_v59 = vpop.f32.mrf.mxu1  ;;  %2395 = vmatpush.bf16.msra.mxu1 %v4146_v8 }
 0x152   :  { %v4529_v63 = vpop.f32.mrf.mxu2  ;;  %2422 = vmatpush.bf16.msra.mxu3 %v4161_v13  ;;  %v4175_v13 = vld [vmem:[#allocation7 + $0x120] sm:$0xff] }
 0x153   :  { %v1204_v43 = vadd.f32 %v4529_v63, %v1191_v38  ;;  %v4141_v38 = vld [vmem:[#allocation7 + $0x10] sm:$0xff] }
 0x154   :  { %2396 = vmatpush.bf16.msra.mxu1 %v4145_v14  ;;  %v4182_v14 = vld [vmem:[#allocation7 + $0x158] sm:$0xff] }
 0x155   :  { %v4531_v4 = vpop.f32.mrf.mxu3 }
 0x156   :  { %v1217_v48 = vadd.f32 %v4531_v4, %v1204_v43  ;;  %2423 = vmatpush.bf16.msra.mxu3 %v4160_v18  ;;  %v4140_v43 = vld [vmem:[#allocation7 + $0x8] sm:$0xff] }
 0x158   :  { %2397 = vmatpush.bf16.msra.mxu1 %v4144_v19 }
 0x15a   :  { %v1205_v26 = vpop.f32.mrf.mxu2  ;;  %2424 = vmatpush.bf16.msra.mxu3 %v4159_v24  ;;  %v4174_v24 = vld [vmem:[#allocation7 + $0x118] sm:$0xff] }
 0x15b   :  { %v3456_v26 = vor.u32 %v4102_v21, %v3453_v57  ;;  %v4190_v21 = vld [vmem:[#allocation7 + $0x198] sm:$0xff] }
 0x15c   :  { %2398 = vmatpush.bf16.msra.mxu1 %v4143_v25  ;;  %v4202_v57 = vld [vmem:[#allocation7 + $0x1f8] sm:$0xff]  ;;  %v4181_v25 = vld [vmem:[#allocation7 + $0x150] sm:$0xff] }
 0x15d   :  { %v1218_v32 = vpop.f32.mrf.mxu3 }
 0x15e   :  { %v4142_v32 = vld [vmem:[#allocation7 + $0x18] sm:$0xff]  ;;  %2425 = vmatpush.bf16.msra.mxu3 %v4158_v31  ;;  %v4173_v31 = vld [vmem:[#allocation7 + $0x110] sm:$0xff] }
 0x160   :  { %2399 = vmatpush.bf16.msra.mxu1 %v4142_v32  ;;  %v4180_v32 = vld [vmem:[#allocation7 + $0x148] sm:$0xff] }
 0x162   :  { %2426 = vmatpush.bf16.msra.mxu3 %v4157_v37 }
 0x164   :  { %2400 = vmatpush.bf16.msra.mxu1 %v4141_v38 }
 0x166   :  { %v1229_v45 = vpop.f32.mrf.mxu0  ;;  %2427 = vmatpush.bf16.msra.mxu3 %v4156_v42 }
 0x167   :  { %v1230_v50 = vadd.f32 %v1229_v45, %v1217_v48  ;;  %v4170_v45 = vld [vmem:[#allocation7 + $0xf8] sm:$0xff] }
 0x168   :  { %v1242_v46 = vpop.f32.mrf.mxu1  ;;  %2401 = vmatpush.bf16.msra.mxu1 %v4140_v43  ;;  %v4194_v48 = vld [vmem:[#allocation7 + $0x1b8] sm:$0xff] }
 0x169   :  { %v1243_v54 = vadd.f32 %v1242_v46, %v1230_v50  ;;  %v4147_v46 = vld [vmem:[#allocation7 + $0x40] sm:$0xff]  ;;  %v4169_v50 = vld [vmem:[#allocation7 + $0xf0] sm:$0xff] }
 0x16a   :  { %2415 = vmatpush.bf16.msra.mxu2 %v4147_v46  ;;  %2428 = vmatpush.bf16.msra.mxu3 %v4155_v30  ;;  %v4199_v46 = vld [vmem:[#allocation7 + $0x1e0] sm:$0xff] }
 0x16c   :  { %2402 = vmatpush.bf16.msra.mxu1 %v4139_v49  ;;  %v4171_v49 = vld [vmem:[#allocation7 + $0x100] sm:$0xff] }
 0x16e   :  { %v1231_v51 = vpop.f32.mrf.mxu0  ;;  %2460 = vmatpush.bf16.msrb.mxu2 %v4186_v47  ;;  %2473 = vmatpush.bf16.msrb.mxu3 %v4194_v48 }
 0x16f   :  { %v4178_v51 = vld [vmem:[#allocation7 + $0x138] sm:$0xff] }
 0x170   :  { %v1244_v53 = vpop.f32.mrf.mxu1  ;;  %2447 = vmatpush.bf16.msrb.mxu1 %v4178_v51 }
 0x171   :  { %v4185_v53 = vld [vmem:[#allocation7 + $0x170] sm:$0xff] }
 0x172   :  { %v1255_v55 = vpop.f32.mrf.mxu2  ;;  %2461 = vmatpush.bf16.msrb.mxu2 %v4185_v53 }
 0x173   :  { %v1256_v58 = vadd.f32 %v1255_v55, %v1243_v54  ;;  %v4193_v54 = vld [vmem:[#allocation7 + $0x1b0] sm:$0xff]  ;;  %v4168_v55 = vld [vmem:[#allocation7 + $0xe8] sm:$0xff] }
 0x174   :  { %v1268_v59 = vpop.f32.mrf.mxu3  ;;  %2474 = vmatpush.bf16.msrb.mxu3 %v4193_v54  ;;  %v4198_v54 = vld [vmem:[#allocation7 + $0x1d8] sm:$0xff] }
 0x175   :  { %v1269_v60 = vadd.f32 %v1268_v59, %v1256_v58  ;;  %v4167_v58 = vld [vmem:[#allocation7 + $0xe0] sm:$0xff]  ;;  %v4166_v59 = vld [vmem:[#allocation7 + $0xd8] sm:$0xff] }
 0x176   :  { %2462 = vmatpush.bf16.msrb.mxu2 %v4184_v61  ;;  %v4196_v61 = vld [vmem:[#allocation7 + $0x1c8] sm:$0xff] }
 0x177   :  { %v1272_v63 = vmax.f32 %v1269_v60, 0.0  ;;  %v4177_v60 = vld [vmem:[#allocation7 + $0x130] sm:$0xff] }
 0x178   :  { %2448 = vmatpush.bf16.msrb.mxu1 %v4177_v60  ;;  %v1768_v11 = vpop.f32.mrf.mxu1 }
 0x179   :  { %v1273_v1 = vpack.c.bf16 %v1272_v63, %v1272_v63 }
 0x17a   :  { %v1257_v4 = vpop.f32.mrf.mxu2  ;;  %2463 = vmatpush.bf16.msrb.mxu2 %v4183_v6 }
 0x17b   :  { %1350 = vmatmul.bf16.vlgmr.msra.gmra.mxu0 %v1273_v1  ;;  %v4192_v1 = vld [vmem:[#allocation7 + $0x1a8] sm:$0xff] }
 0x17c   :  { %v1270_v5 = vpop.f32.mrf.mxu3  ;;  %1850 = vmatpush.bf16.msra.mxu0 %v3584_v0  ;;  %2475 = vmatpush.bf16.msrb.mxu3 %v4192_v1 }
 0x17d   :  { %v4176_v5 = vld [vmem:[#allocation7 + $0x128] sm:$0xff] }
 0x17e   :  { %2449 = vmatpush.bf16.msrb.mxu1 %v4176_v5  ;;  %2464 = vmatpush.bf16.msrb.mxu2 %v4182_v14  ;;  %v4209_v14 = vld [vmem:[%s4668_s12 + $0x30] sm:$0xff] }
 0x180   :  { %1851 = vmatpush.bf16.msra.mxu0 %v3552_v9  ;;  %2476 = vmatpush.bf16.msrb.mxu3 %v4191_v12  ;;  %v1770_v29 = vpop.f32.mrf.mxu1 }
 0x182   :  { %v1781_v0 = vpop.f32.mrf.mxu2  ;;  %2450 = vmatpush.bf16.msrb.mxu1 %v4175_v13  ;;  %2465 = vmatpush.bf16.msrb.mxu2 %v4181_v25  ;;  %v4210_v13 = vld [vmem:[%s4668_s12 + $0x38] sm:$0xff]  ;;  %v4205_v25 = vld [vmem:[%s4668_s12 + $0x10] sm:$0xff] }
 0x184   :  { %1852 = vmatpush.bf16.msra.mxu0 %v3520_v15  ;;  %v1794_v4 = vpop.f32.mrf.mxu3  ;;  %2477 = vmatpush.bf16.msrb.mxu3 %v4190_v21  ;;  %v4207_v21 = vld [vmem:[%s4668_s12 + $0x20] sm:$0xff] }
 0x186   :  { %2451 = vmatpush.bf16.msrb.mxu1 %v4174_v24  ;;  %2466 = vmatpush.bf16.msrb.mxu2 %v4180_v32  ;;  %v4203_v32 = vld [vmem:[%s4668_s12] sm:$0xff] }
 0x188   :  { %1853 = vmatpush.bf16.msra.mxu0 %v3488_v20  ;;  %2478 = vmatpush.bf16.msrb.mxu3 %v4189_v27 }
 0x18a   :  { %v1783_v20 = vpop.f32.mrf.mxu2  ;;  %2452 = vmatpush.bf16.msrb.mxu1 %v4173_v31  ;;  %2467 = vmatpush.bf16.msrb.mxu2 %v4179_v23  ;;  %v4237_v31 = vld [vmem:[%s4667_s11] ss:$0 sm:$0xff] }
 0x18b   :  { %1806 = vmatmul.bf16.vlgmr.msrb.gmra.mxu0 %v4526_v56 }
 0x18c   :  { %1854 = vmatpush.bf16.msra.mxu0 %v3456_v26  ;;  %v1796_v26 = vpop.f32.mrf.mxu3  ;;  %2479 = vmatpush.bf16.msrb.mxu3 %v4188_v35  ;;  %v4217_v35 = vld [vmem:[%s4671_s15 + $0x10] sm:$0xff] }
 0x190   :  { %1855 = vmatpush.bf16.msra.mxu0 %v3424_v33 }
 0x192   :  { %v1833_v34 = vpop.f32.mrf.mxu2 }
 0x194   :  { %1856 = vmatpush.bf16.msra.mxu0 %v3392_v39  ;;  %v4172_v39 = vld [vmem:[#allocation7 + $0x108] sm:$0xff] }
 0x195   :  { %2453 = vmatpush.bf16.msrb.mxu1 %v4172_v39 }
 0x198   :  { %1857 = vmatpush.bf16.msra.mxu0 %v3360_v44 }
 0x199   :  { %2454 = vmatpush.bf16.msrb.mxu1 %v4171_v49  ;;  %v4214_v49 = vld [vmem:[%s4670_s14 + $0x18] sm:$0xff] }
 0x19a   :  { %v1835_v53 = vpop.f32.mrf.mxu2 }
 0x19b   :  { %1858 = vmatmul.bf16.vlgmr.msra.gmra.mxu0 %v4526_v56  ;;  %v4550_v56 = vld [vmem:[%s4665_s9] sm:$0xff] }
 0x19c   :  { %2434 = vmatpush.bf16.msrb.mxu0 %v4170_v45  ;;  %v1424_v63 = vperm.slane %v4550_v56, 1  ;;  %v1425_v3 = vperm.slane %v4550_v56, 2  ;;  %v1423_v9 = vperm.slane %v4550_v56, 0  ;;  %v1428_v33 = vperm.slane %v4550_v56, 5  ;;  %v4187_v45 = vld [vmem:[#allocation7 + $0x180] sm:$0xff] }
 0x19d   :  { %v1429_v38 = vperm.slane %v4550_v56, 6  ;;  %v1427_v42 = vperm.slane %v4550_v56, 4  ;;  %2480 = vmatpush.bf16.msrb.mxu3 %v4187_v45  ;;  %v1426_v1 = vperm.slane %v4550_v56, 3  ;;  %v4211_v53 = vld [vmem:[%s4670_s14] sm:$0xff] }
 0x19e   :  { %v1782_v2 = vadd.f32 %v1781_v0, %v1424_v63  ;;  %v1795_v8 = vadd.f32 %v1794_v4, %v1425_v3  ;;  %v1769_v17 = vadd.f32 %v1768_v11, %v1423_v9  ;;  %v1834_v37 = vadd.f32 %v1833_v34, %v1428_v33  ;;  %v4195_v63 = vld [vmem:[#allocation7 + $0x1c0] sm:$0xff]  ;;  %v4218_v34 = vld [vmem:[%s4671_s15 + $0x18] sm:$0xff] }
 0x1a0   :  { %2435 = vmatpush.bf16.msrb.mxu0 %v4169_v50  ;;  %v1864_v7 = vmax.f32 %v1782_v2, 0.0  ;;  %v1865_v16 = vmax.f32 %v1795_v8, 0.0  ;;  %v1863_v19 = vmax.f32 %v1769_v17, 0.0  ;;  %v1868_v40 = vmax.f32 %v1834_v37, 0.0  ;;  %v4216_v37 = vld [vmem:[%s4671_s15 + $0x8] sm:$0xff] }
 0x1a2   :  { %v1872_v15 = vpack.c.bf16 %v1864_v7, %v1864_v7  ;;  %v1873_v18 = vpack.c.bf16 %v1865_v16, %v1865_v16  ;;  %v1871_v22 = vpack.c.bf16 %v1863_v19, %v1863_v19  ;;  %v1876_v47 = vpack.c.bf16 %v1868_v40, %v1868_v40  ;;  %v4208_v19 = vld [vmem:[%s4668_s12 + $0x28] sm:$0xff] }
 0x1a3   :  { %v1430_v7 = vperm.slane %v4550_v56, 7 }
 0x1a4   :  { %2436 = vmatpush.bf16.msrb.mxu0 %v4168_v55  ;;  %2416 = vmatmul.bf16.vlgmr.msra.gmra.mxu2 %v1872_v15 }
 0x1a5   :  { %2429 = vmatmul.bf16.vlgmr.msra.gmra.mxu3 %v1873_v18  ;;  %2403 = vmatmul.bf16.vlgmr.msra.gmra.mxu1 %v1871_v22  ;;  %v4206_v22 = vld [vmem:[%s4668_s12 + $0x18] sm:$0xff] }
 0x1a6   :  { %2569 = vmatpush.bf16.msra.mxu1 %v4210_v13  ;;  %2631 = vmatpush.bf16.msra.mxu3 %v4218_v34 }
 0x1a8   :  { %2437 = vmatpush.bf16.msrb.mxu0 %v4167_v58  ;;  %v4197_v58 = vld [vmem:[#allocation7 + $0x1d0] sm:$0xff] }
 0x1aa   :  { %2570 = vmatpush.bf16.msra.mxu1 %v4209_v14  ;;  %2632 = vmatpush.bf16.msra.mxu3 %v4217_v35 }
 0x1ac   :  { %2438 = vmatpush.bf16.msrb.mxu0 %v4166_v59 }
 0x1ae   :  { %2571 = vmatpush.bf16.msra.mxu1 %v4208_v19  ;;  %2633 = vmatpush.bf16.msra.mxu3 %v4216_v37 }
 0x1b0   :  { %2439 = vmatpush.bf16.msrb.mxu0 %v4165_v62 }
 0x1b2   :  { %2572 = vmatpush.bf16.msra.mxu1 %v4207_v21 }
 0x1b4   :  { %2440 = vmatpush.bf16.msrb.mxu0 %v4164_v10  ;;  %2468 = vmatmul.bf16.vlgmr.msrb.gmra.mxu2 %v1876_v47 }
 0x1b6   :  { %2573 = vmatpush.bf16.msra.mxu1 %v4206_v22 }
 0x1b8   :  { %2441 = vmatpush.bf16.msrb.mxu0 %v4163_v52 }
 0x1ba   :  { %2574 = vmatpush.bf16.msra.mxu1 %v4205_v25 }
 0x1bc   :  { %2486 = vmatpush.bf16.msra.mxu0 %v4202_v57 }
 0x1c0   :  { %2487 = vmatpush.bf16.msra.mxu0 %v4201_v28  ;;  %v4204_v28 = vld [vmem:[%s4668_s12 + $0x8] sm:$0xff] }
 0x1c1   :  { %2575 = vmatpush.bf16.msra.mxu1 %v4204_v28 }
 0x1c4   :  { %2488 = vmatpush.bf16.msra.mxu0 %v4200_v36 }
 0x1c5   :  { %2576 = vmatpush.bf16.msra.mxu1 %v4203_v32 }
 0x1c8   :  { %2489 = vmatpush.bf16.msra.mxu0 %v4199_v46 }
 0x1cc   :  { %v1820_v44 = vpop.f32.mrf.mxu1  ;;  %2490 = vmatpush.bf16.msra.mxu0 %v4198_v54  ;;  %v4226_v54 = vld [vmem:[%s4673_s17 + $0x38] sm:$0xff] }
 0x1cd   :  { %v1821_v30 = vadd.f32 %v1820_v44, %v1427_v42  ;;  %2755 = vmatpush.bf16.msra.mxu2 %v4226_v54 }
 0x1cf   :  { %v1867_v50 = vmax.f32 %v1821_v30, 0.0 }
 0x1d0   :  { %v1846_v41 = vpop.f32.mrf.mxu3  ;;  %2491 = vmatpush.bf16.msra.mxu0 %v4197_v58  ;;  %v4238_v58 = vld [vmem:[%s4669_s13] ss:$0 sm:$0xff] }
 0x1d1   :  { %v1847_v43 = vadd.f32 %v1846_v41, %v1429_v38  ;;  %v1875_v55 = vpack.c.bf16 %v1867_v50, %v1867_v50  ;;  %v4213_v50 = vld [vmem:[%s4670_s14 + $0x10] sm:$0xff] }
 0x1d3   :  { %v1869_v48 = vmax.f32 %v1847_v43, 0.0  ;;  %2455 = vmatmul.bf16.vlgmr.msrb.gmra.mxu1 %v1875_v55  ;;  %v4225_v55 = vld [vmem:[%s4673_s17 + $0x30] sm:$0xff] }
 0x1d4   :  { %v1822_v60 = vpop.f32.mrf.mxu1  ;;  %2492 = vmatpush.bf16.msra.mxu0 %v4196_v61  ;;  %2756 = vmatpush.bf16.msra.mxu2 %v4225_v55 }
 0x1d5   :  { %v1877_v51 = vpack.c.bf16 %v1869_v48, %v1869_v48  ;;  %v4215_v48 = vld [vmem:[%s4671_s15] sm:$0xff] }
 0x1d6   :  { %2634 = vmatpush.bf16.msra.mxu3 %v4215_v48 }
 0x1d7   :  { %2481 = vmatmul.bf16.vlgmr.msrb.gmra.mxu3 %v1877_v51  ;;  %v4212_v51 = vld [vmem:[%s4670_s14 + $0x8] sm:$0xff] }
 0x1d8   :  { %v1848_v59 = vpop.f32.mrf.mxu3  ;;  %2493 = vmatpush.bf16.msra.mxu0 %v4195_v63 }
 0x1da   :  { %2671 = vmatpush.bf16.msrb.mxu3 %v4214_v49 }
 0x1de   :  { %2672 = vmatpush.bf16.msrb.mxu3 %v4213_v50 }
 0x1e2   :  { %2673 = vmatpush.bf16.msrb.mxu3 %v4212_v51 }
 0x1e6   :  { %2674 = vmatpush.bf16.msrb.mxu3 %v4211_v53 }
 0x1f8   :  { %v4558_v62 = vpop.f32.mrf.mxu0 }
 0x200   :  { %v1353_v0 = vpop.f32.mrf.mxu0 }
 0x201   :  { %v4236_v0 = vld [vmem:[%s4663_s7] ss:$0 sm:$0xff] }
 0x208   :  { %v1807_v2 = vpop.f32.mrf.mxu0 }
 0x209   :  { %v1808_v3 = vadd.f32 %v1807_v2, %v1426_v1  ;;  %v1352_v1 = vadd.f32 %v4236_v0, %v4558_v62  ;;  %v4221_v62 = vld [vmem:[%s4673_s17 + $0x10] sm:$0xff] }
 0x20b   :  { %v1866_v4 = vmax.f32 %v1808_v3, 0.0  ;;  %v1355_v2 = vpack.c.bf16 %v1352_v1, %v1352_v1  ;;  %v4224_v3 = vld [vmem:[%s4673_s17 + $0x28] sm:$0xff] }
 0x20c   :  { %2757 = vmatpush.bf16.msra.mxu2 %v4224_v3 }
 0x20d   :  { %v1874_v5 = vpack.c.bf16 %v1866_v4, %v1866_v4  ;;  %v4223_v4 = vld [vmem:[%s4673_s17 + $0x20] sm:$0xff] }
 0x20f   :  { %2442 = vmatmul.bf16.vlgmr.msrb.gmra.mxu0 %v1874_v5  ;;  %v4222_v5 = vld [vmem:[%s4673_s17 + $0x18] sm:$0xff] }
 0x210   :  { %v1809_v6 = vpop.f32.mrf.mxu0  ;;  %2758 = vmatpush.bf16.msra.mxu2 %v4223_v4 }
 0x211   :  { %v4220_v6 = vld [vmem:[%s4673_s17 + $0x8] sm:$0xff] }
 0x214   :  { %2759 = vmatpush.bf16.msra.mxu2 %v4222_v5 }
 0x218   :  { %v1859_v8 = vpop.f32.mrf.mxu0  ;;  %2760 = vmatpush.bf16.msra.mxu2 %v4221_v62 }
 0x219   :  { %v1860_v9 = vadd.f32 %v1859_v8, %v1430_v7  ;;  %v4219_v7 = vld [vmem:[%s4673_s17] sm:$0xff] }
 0x21b   :  { %v1870_v10 = vmax.f32 %v1860_v9, 0.0 }
 0x21c   :  { %2761 = vmatpush.bf16.msra.mxu2 %v4220_v6 }
 0x21d   :  { %v1878_v11 = vpack.c.bf16 %v1870_v10, %v1870_v10  ;;  %v4239_v10 = vld [vmem:[%s4672_s16] ss:$0 sm:$0xff] }
 0x21f   :  { %2494 = vmatmul.bf16.vlgmr.msra.gmra.mxu0 %v1878_v11 }
 0x220   :  { %v1861_v12 = vpop.f32.mrf.mxu0  ;;  %2762 = vmatpush.bf16.msra.mxu2 %v4219_v7 }
 0x222   :  { %v2404_v15 = vpop.f32.mrf.mxu1 }
 0x223   :  { %v2405_v33 = vadd.f32 %v4237_v31, %v2404_v15 }
 0x227   :  { %v2417_v16 = vpop.f32.mrf.mxu2 }
 0x228   :  { %v2430_v17 = vpop.f32.mrf.mxu3  ;;  %v2418_v36 = vadd.f32 %v2417_v16, %v2405_v33 }
 0x22a   :  { %v2406_v56 = vpop.f32.mrf.mxu1  ;;  %v2431_v38 = vadd.f32 %v2430_v17, %v2418_v36  ;;  %v4240_v17 = vld [vmem:[%s4674_s18] ss:$0 sm:$0xff] }
 0x22f   :  { %v2419_v52 = vpop.f32.mrf.mxu2 }
 0x230   :  { %v2432_v18 = vpop.f32.mrf.mxu3 }
 0x231   :  { %v4241_v18 = vld [vmem:[%s4689_s3] ss:$0 sm:$0xff] }
 0x237   :  { %v2469_v57 = vpop.f32.mrf.mxu2 }
 0x23f   :  { %v2471_v27 = vpop.f32.mrf.mxu2 }
 0x250   :  { %v2456_v20 = vpop.f32.mrf.mxu1 }
 0x258   :  { %v2458_v26 = vpop.f32.mrf.mxu1 }
 0x25a   :  { %v2482_v24 = vpop.f32.mrf.mxu3 }
 0x262   :  { %v2484_v29 = vpop.f32.mrf.mxu3 }
 0x28c   :  { %v2443_v39 = vpop.f32.mrf.mxu0 }
 0x28d   :  { %v2444_v23 = vadd.f32 %v2443_v39, %v2431_v38 }
 0x28f   :  { %v2457_v40 = vadd.f32 %v2456_v20, %v2444_v23 }
 0x291   :  { %v2470_v42 = vadd.f32 %v2469_v57, %v2457_v40 }
 0x293   :  { %v2483_v43 = vadd.f32 %v2482_v24, %v2470_v42 }
 0x294   :  { %v2445_v41 = vpop.f32.mrf.mxu0 }
 0x29c   :  { %v2495_v44 = vpop.f32.mrf.mxu0 }
 0x29d   :  { %v2496_v45 = vadd.f32 %v2495_v44, %v2483_v43 }
 0x29f   :  { %v2499_v46 = vmax.f32 %v2496_v45, 0.0 }
 0x2a1   :  { %v2500_v47 = vpack.c.bf16 %v2499_v46, %v2499_v46 }
 0x2a3   :  { %2577 = vmatmul.bf16.vlgmr.msra.gmra.mxu1 %v2500_v47 }
 0x2a4   :  { %v2497_v30 = vpop.f32.mrf.mxu0 }
 0x320   :  { %v2578_v59 = vpop.f32.mrf.mxu1 }
 0x321   :  { %v2579_v60 = vadd.f32 %v4238_v58, %v2578_v59 }
 0x323   :  { %v2582_v61 = vpack.c.bf16 %v2579_v60, %v2579_v60 }
 0x325   :  { %3889 = vmatmul.msk.bf16.vlgmr.msra.gmra.mxu3 %vm2623_vm0, %v2582_v61 }
 0x328   :  { %v2580_v63 = vpop.f32.mrf.mxu1 }
 0x335   :  { %3906 = vmatmul.msk.bf16.vlgmr.msrb.gmra.mxu3 %vm2623_vm0, %v1355_v2 }
 0x3a8   :  { %v2636_v8 = vpop.f32.mrf.mxu3 }
 0x3b0   :  { %v2638_v9 = vpop.f32.mrf.mxu3 }
 0x3b8   :  { %v2676_v11 = vpop.f32.mrf.mxu3 }
 0x3b9   :  { %v2677_v12 = vadd.f32 %v2676_v11, %v2636_v8 }
 0x3bb   :  { %v2684_v13 = vadd.f32 %v4239_v10, %v2677_v12 }
 0x3bd   :  { %v2685_v14 = vmax.f32 %v2684_v13, 0.0 }
 0x3bf   :  { %v2686_v15 = vpack.c.bf16 %v2685_v14, %v2685_v14 }
 0x3c0   :  { %v2678_v16 = vpop.f32.mrf.mxu3 }
 0x3c1   :  { %2763 = vmatmul.bf16.vlgmr.msra.gmra.mxu2 %v2686_v15 }
 0x444   :  { %v2764_v56 = vpop.f32.mrf.mxu2 }
 0x445   :  { %v2765_v52 = vadd.f32 %v4240_v17, %v2764_v56 }
 0x447   :  { %v2768_v19 = vmax.f32 %v2765_v52, 0.0 }
 0x449   :  { %v2773_v20 = vmul.f32 %v4241_v18, %v2768_v19 }
 0x44b   :  { %2774 = vadd.xlane.f32.xlu0 %v2773_v20 }
 0x44c   :  { %v2766_v21 = vpop.f32.mrf.mxu2 }
 0x4be   :  { %v2775_v57 = vpop.xlane.xlu0 %2774 }
 0x4bf   :  { %2777 = vst.msk [vmem:[%s4690_s27] sm:$0xff] %vm2776_vm1, %v2775_v57 }
 0x4c0   :  { %2782 = vsyncpa [#allocation3], 1 }
 0x4c1   :  { %2783 = vsyncpa [#allocation5], 1 }
 0x4c2   :  { %2784 = vsyncpa [#allocation8], 1 }

</bundles_post_ra>
